<compile_context>
chip_gen: v6e
topology: v6e:2x2x1
jax: 0.10.0
libtpu: 0.0.40
codegen_flags: <defaults>
</compile_context>

<pallas_src>
import math

import numpy as np
import jax
import jax.numpy as jnp
from jax.experimental import pallas as pl
from jax.experimental.pallas import tpu as pltpu

# ---------------- model hyper-parameters ----------------
B = 2            # batch
T = 8            # max sequence length
D_IN = 4         # bbox features
D_MODEL = 32     # args.d_model
NUM_HEADS = 4    # args.num_heads
DFF = 64         # args.dff
NUM_LAYERS = 2   # args.num_layers
HEAD_DIM = D_MODEL // NUM_HEADS
BT = B * T
LN_EPS = 1e-5
NEG_INF = -1e9   # additive mask (lengths >= 1 so no row is fully masked)


# ---------------- slab row layout (8-row aligned regions, lanes from 0) ----------------
def _r(n):
    return (n + 7) // 8 * 8


_EMB_W = 0                         # [D_IN, D]
_EMB_PB = _EMB_W + _r(D_IN)        # [BT, D]   embed bias + PE, pre-tiled over batch
_POOL = _EMB_PB + _r(BT)           # [B, BT]   block-diagonal mean-pool matrix
_CLS_W = _POOL + _r(B)             # [1, D]
_CLS_B = _CLS_W + 8                # [1, 1]
_BLK = _CLS_B + 8                  # [BT, BT]  constant block-diagonal attention bias
_LAYER0 = _BLK + _r(BT)
# per-layer relative offsets
_OUT_B, _LN1_W, _LN1_B, _LN2_W, _LN2_B, _FF1_B, _FF2_B = 0, 8, 16, 24, 32, 40, 48
_FF1_W = 56                        # [D, DFF]
_FF2_W = _FF1_W + _r(D_MODEL)      # [DFF, D]
_LAYER_STRIDE = _FF2_W + _r(DFF)
_SLAB_ROWS = _LAYER0 + NUM_LAYERS * _LAYER_STRIDE   # 368 rows -> ~184 KiB f32


# ------------------------------- fused kernel -------------------------------
def _layernorm(x, w, b):
    mu = jnp.mean(x, axis=-1, keepdims=True)
    xc = x - mu
    var = jnp.mean(xc * xc, axis=-1, keepdims=True)
    return xc * jax.lax.rsqrt(var + LN_EPS) * w + b


def fused_forward_kernel(len_ref,     # SMEM (B,) int32
                         bbox_ref,    # VMEM (BT, D_IN)
                         qkvw_ref,    # VMEM (L*5, H, D, Hd)  slots: Q(scaled),K,V,OutT,Qbias
                         slab_ref,    # VMEM (_SLAB_ROWS, 128) packed params
                         o_ref):      # VMEM (1, B)
    f32 = jnp.float32

    # ---- embedding + positional encoding (batch folded: M = B*T) ----
    x = jnp.dot(bbox_ref[...], slab_ref[_EMB_W:_EMB_W + D_IN, :D_MODEL],
                preferred_element_type=f32) + slab_ref[_EMB_PB:_EMB_PB + BT, :D_MODEL]

    # ---- attention bias: constant block-diagonal part (slab) + runtime key validity ----
    col = jax.lax.broadcasted_iota(jnp.int32, (1, BT), 1)
    key_pos = col % T
    key_len = jnp.zeros((1, BT), jnp.int32)
    for b in range(B):                                   # B=2, unrolled at trace time
        key_len = jnp.where((col >= b * T) & (col < (b + 1) * T), len_ref[b], key_len)
    valid_bias = jnp.where(key_pos < key_len, 0.0, NEG_INF).astype(f32)   # [1, BT]
    bias = slab_ref[_BLK:_BLK + BT, :BT] + valid_bias                      # [BT, BT]

    # ---- transformer encoder layers (post-norm, relu FFN) ----
    for l in range(NUM_LAYERS):                          # NUM_LAYERS=2, unrolled
        base = _LAYER0 + l * _LAYER_STRIDE
        wb = l * 5

        xb = jnp.broadcast_to(x[None], (NUM_HEADS, BT, D_MODEL))           # [H, BT, D]
        qbias = qkvw_ref[wb + 4][:, :BT, :]                                # [H, BT, Hd]
        q = jax.lax.dot_general(xb, qkvw_ref[wb + 0],
                                (((2,), (1,)), ((0,), (0,))),
                                preferred_element_type=f32) + qbias        # [H, BT, Hd]
        k = jax.lax.dot_general(xb, qkvw_ref[wb + 1],
                                (((2,), (1,)), ((0,), (0,))),
                                preferred_element_type=f32)
        v = jax.lax.dot_general(xb, qkvw_ref[wb + 2],
                                (((2,), (1,)), ((0,), (0,))),
                                preferred_element_type=f32)

        s = jax.lax.dot_general(q, k, (((2,), (2,)), ((0,), (0,))),
                                preferred_element_type=f32) + bias         # [H, BT, BT]
        s = s - jnp.max(s, axis=-1, keepdims=True)
        p = jnp.exp(s)
        p = p * pl.reciprocal(jnp.sum(p, axis=-1, keepdims=True), approx=True)

        o = jax.lax.dot_general(p, v, (((2,), (1,)), ((0,), (0,))),
                                preferred_element_type=f32)                # [H, BT, Hd]
        # fold head-concat into out_proj: per-head contraction then sum over heads
        ph = jax.lax.dot_general(o, qkvw_ref[wb + 3],
                                 (((2,), (2,)), ((0,), (0,))),
                                 preferred_element_type=f32)               # [H, BT, D]
        attn = jnp.sum(ph, axis=0) + slab_ref[base + _OUT_B:base + _OUT_B + 1, :D_MODEL]

        x = _layernorm(x + attn,
                       slab_ref[base + _LN1_W:base + _LN1_W + 1, :D_MODEL],
                       slab_ref[base + _LN1_B:base + _LN1_B + 1, :D_MODEL])
        h1 = jnp.maximum(
            jnp.dot(x, slab_ref[base + _FF1_W:base + _FF1_W + D_MODEL, :DFF],
                    preferred_element_type=f32)
            + slab_ref[base + _FF1_B:base + _FF1_B + 1, :DFF], 0.0)
        ff = jnp.dot(h1, slab_ref[base + _FF2_W:base + _FF2_W + DFF, :D_MODEL],
                     preferred_element_type=f32) \
            + slab_ref[base + _FF2_B:base + _FF2_B + 1, :D_MODEL]
        x = _layernorm(x + ff,
                       slab_ref[base + _LN2_W:base + _LN2_W + 1, :D_MODEL],
                       slab_ref[base + _LN2_B:base + _LN2_B + 1, :D_MODEL])

    # ---- mean-pool over ALL T positions + classifier + sigmoid ----
    pooled = jnp.dot(slab_ref[_POOL:_POOL + B, :BT], x,
                     preferred_element_type=f32)                            # [B, D]
    logit = jax.lax.dot_general(slab_ref[_CLS_W:_CLS_W + 1, :D_MODEL], pooled,
                                (((1,), (1,)), ((), ())),
                                preferred_element_type=f32) \
        + slab_ref[_CLS_B:_CLS_B + 1, :1]                                   # [1, B]
    o_ref[...] = jax.nn.sigmoid(logit)


# ----------------------------- pallas wrapper -----------------------------
_VMEM_SPEC = pl.BlockSpec(memory_space=pltpu.MemorySpace.VMEM)
_SMEM_SPEC = pl.BlockSpec(memory_space=pltpu.MemorySpace.SMEM)


@jax.jit
def model_forward(bbox, lengths, packed):
    bbox_flat = bbox.reshape(BT, D_IN)
    out = pl.pallas_call(
        fused_forward_kernel,
        out_shape=jax.ShapeDtypeStruct((1, B), jnp.float32),
        in_specs=[_SMEM_SPEC, _VMEM_SPEC, _VMEM_SPEC, _VMEM_SPEC],
        out_specs=_VMEM_SPEC,
    )(lengths.astype(jnp.int32), bbox_flat, packed["qkvw"], packed["slab"])
    return out[0]                                        # [B] probabilities


# ----------------------------- parameters ---------------------------------
def positional_encoding(max_len, d_model):
    position = np.arange(max_len, dtype=np.float32)[:, None]
    div_term = np.exp(np.arange(0, d_model, 2, dtype=np.float32)
                      * (-math.log(10000.0) / d_model))
    pe = np.zeros((max_len, d_model), dtype=np.float32)
    pe[:, 0::2] = np.sin(position * div_term)
    pe[:, 1::2] = np.cos(position * div_term)
    return pe


def init_params(key):
    """PyTorch-layout parameters (Linear weights stored [out, in], packed in_proj)."""
    keys = iter(jax.random.split(key, 64))
    norm = lambda shape, s=0.05: (s * jax.random.normal(next(keys), shape)).astype(jnp.float32)
    params = {
        "embed_w": norm((D_MODEL, D_IN)),
        "embed_b": norm((D_MODEL,)),
        "cls_w": norm((1, D_MODEL)),
        "cls_b": norm((1,)),
        "layers": [],
    }
    for _ in range(NUM_LAYERS):
        params["layers"].append({
            "in_w": norm((3 * D_MODEL, D_MODEL)),
            "in_b": norm((3 * D_MODEL,)),
            "out_w": norm((D_MODEL, D_MODEL)),
            "out_b": norm((D_MODEL,)),
            "ln1_w": jnp.ones((D_MODEL,), jnp.float32),
            "ln1_b": jnp.zeros((D_MODEL,), jnp.float32),
            "ln2_w": jnp.ones((D_MODEL,), jnp.float32),
            "ln2_b": jnp.zeros((D_MODEL,), jnp.float32),
            "ff1_w": norm((DFF, D_MODEL)),
            "ff1_b": norm((DFF,)),
            "ff2_w": norm((D_MODEL, DFF)),
            "ff2_b": norm((D_MODEL,)),
        })
    return params


def pack_params(params):
    """Host-side layout plumbing:
       - ONE f32 slab [rows,128] holding everything 2-D-ish (embed, PE+bias, pool,
         classifier, constant block-diag bias, LN, FFN, folded out_proj bias)
       - ONE head-major weight array [L*5, H, D, Hd]: Q(pre-scaled by 1/sqrt(Hd)),
         K, V, OutT per head, plus the pre-broadcast scaled Q bias
       - K bias dropped (softmax invariant); V bias folded into out_proj bias."""
    scale = 1.0 / math.sqrt(HEAD_DIM)

    slab = np.zeros((_SLAB_ROWS, 128), np.float32)
    qkvw = np.zeros((NUM_LAYERS * 5, NUM_HEADS, D_MODEL, HEAD_DIM), np.float32)

    emb_w = np.asarray(params["embed_w"], np.float32)            # [D, D_IN]
    emb_b = np.asarray(params["embed_b"], np.float32)            # [D]
    pe = positional_encoding(T, D_MODEL)                         # [T, D]

    slab[_EMB_W:_EMB_W + D_IN, :D_MODEL] = emb_w.T
    slab[_EMB_PB:_EMB_PB + BT, :D_MODEL] = np.tile(pe + emb_b[None, :], (B, 1))

    pool = np.zeros((B, BT), np.float32)
    for b in range(B):
        pool[b, b * T:(b + 1) * T] = 1.0 / T                     # avg over ALL T positions
    slab[_POOL:_POOL + B, :BT] = pool

    slab[_CLS_W, :D_MODEL] = np.asarray(params["cls_w"], np.float32)[0]
    slab[_CLS_B, 0] = float(np.asarray(params["cls_b"], np.float32)[0])

    seq = np.arange(BT) // T
    slab[_BLK:_BLK + BT, :BT] = np.where(seq[:, None] == seq[None, :],
                                         0.0, NEG_INF).astype(np.float32)

    for l, lp in enumerate(params["layers"]):
        in_w = np.asarray(lp["in_w"], np.float32)                # [3D, D]
        in_b = np.asarray(lp["in_b"], np.float32)                # [3D]
        out_w = np.asarray(lp["out_w"], np.float32)              # [D, D]
        out_b = np.asarray(lp["out_b"], np.float32)              # [D]

        for h in range(NUM_HEADS):
            r0, r1 = h * HEAD_DIM, (h + 1) * HEAD_DIM
            qkvw[l * 5 + 0, h] = scale * in_w[r0:r1, :].T                    # Q (scaled)
            qkvw[l * 5 + 1, h] = in_w[D_MODEL + r0:D_MODEL + r1, :].T        # K
            qkvw[l * 5 + 2, h] = in_w[2 * D_MODEL + r0:2 * D_MODEL + r1, :].T  # V
            qkvw[l * 5 + 3, h] = out_w[:, r0:r1]                              # OutT
            qkvw[l * 5 + 4, h] = np.tile(scale * in_b[r0:r1][None, :], (D_MODEL, 1))

        base = _LAYER0 + l * _LAYER_STRIDE
        # V bias folded (softmax rows sum to 1); K bias dropped (row-constant shift).
        out_b_fold = out_b + in_b[2 * D_MODEL:] @ out_w.T
        slab[base + _OUT_B, :D_MODEL] = out_b_fold
        slab[base + _LN1_W, :D_MODEL] = np.asarray(lp["ln1_w"], np.float32)
        slab[base + _LN1_B, :D_MODEL] = np.asarray(lp["ln1_b"], np.float32)
        slab[base + _LN2_W, :D_MODEL] = np.asarray(lp["ln2_w"], np.float32)
        slab[base + _LN2_B, :D_MODEL] = np.asarray(lp["ln2_b"], np.float32)
        slab[base + _FF1_B, :DFF] = np.asarray(lp["ff1_b"], np.float32)
        slab[base + _FF2_B, :D_MODEL] = np.asarray(lp["ff2_b"], np.float32)
        slab[base + _FF1_W:base + _FF1_W + D_MODEL, :DFF] = np.asarray(lp["ff1_w"], np.float32).T
        slab[base + _FF2_W:base + _FF2_W + DFF, :D_MODEL] = np.asarray(lp["ff2_w"], np.float32).T

    return {"slab": jnp.asarray(slab), "qkvw": jnp.asarray(qkvw)}


# ----------------------------------- main -----------------------------------
if __name__ == "__main__":
    key = jax.random.PRNGKey(0)
    k_param, k_bbox = jax.random.split(key)

    params = init_params(k_param)
    packed = pack_params(params)

    bbox = jax.random.uniform(k_bbox, (B, T, D_IN), dtype=jnp.float32)
    lengths = jnp.array([5, 8], dtype=jnp.int32)          # lengths >= 1 assumed
    # zero out padded positions (module assumes 0-padded input)
    valid = (jnp.arange(T)[None, :] < lengths[:, None]).astype(jnp.float32)
    bbox = bbox * valid[:, :, None]

    probs = jax.block_until_ready(model_forward(bbox, lengths, packed))

    assert probs.shape == (B,)
    assert bool(jnp.all(jnp.isfinite(probs)))
    assert bool(jnp.all((probs > 0.0) & (probs < 1.0)))
    print("KERNEL_OK")
</pallas_src>

<mosaic_0001>
module attributes {stable_mosaic.version = 11 : i64} {
  func.func @fused_forward_kernel(%arg0: memref<2xi32, #tpu.memory_space<smem>>, %arg1: memref<16x4xf32, #tpu.memory_space<vmem>>, %arg2: memref<10x4x32x8xf32, #tpu.memory_space<vmem>>, %arg3: memref<368x128xf32, #tpu.memory_space<vmem>>, %arg4: memref<1x2xf32, #tpu.memory_space<vmem>>) attributes {dimension_semantics = [], scalar_prefetch = 0 : i64, scratch_operands = 0 : i64, tpu.core_type = #tpu.core_type<tc>} {
    %c0 = arith.constant 0 : index
    %c0_0 = arith.constant 0 : index
    %0 = vector.load %arg1[%c0, %c0_0] : memref<16x4xf32, #tpu.memory_space<vmem>>, vector<16x4xf32>
    %c0_1 = arith.constant 0 : index
    %c0_2 = arith.constant 0 : index
    %1 = vector.load %arg3[%c0_1, %c0_2] : memref<368x128xf32, #tpu.memory_space<vmem>>, vector<4x32xf32>
    %cst = arith.constant dense<0.000000e+00> : vector<16x32xf32>
    %2 = tpu.matmul %0, %1, %cst {dimension_numbers = #tpu.dot_dimension_numbers<[1], [0], [0], [1], [0, 0, 1, 1], [], []>} : vector<16x4xf32>, vector<4x32xf32>, vector<16x32xf32> -> vector<16x32xf32>
    %c8 = arith.constant 8 : index
    %c0_3 = arith.constant 0 : index
    %3 = vector.load %arg3[%c8, %c0_3] : memref<368x128xf32, #tpu.memory_space<vmem>>, vector<16x32xf32>
    %4 = arith.addf %2, %3 : vector<16x32xf32>
    %5 = tpu.iota {dimensions = array<i32: 1>} : vector<1x16xi32>
    %c8_i32 = arith.constant 8 : i32
    %c0_i32 = arith.constant 0 : i32
    %6 = arith.cmpi eq, %c8_i32, %c0_i32 : i32
    %c1_i32 = arith.constant 1 : i32
    %7 = arith.select %6, %c1_i32, %c8_i32 : i32
    %8 = vector.broadcast %7 : i32 to vector<1x16xi32>
    %9 = arith.remsi %5, %8 : vector<1x16xi32>
    %c0_i32_4 = arith.constant 0 : i32
    %10 = vector.broadcast %c0_i32_4 : i32 to vector<1x16xi32>
    %11 = arith.cmpi ne, %9, %10 : vector<1x16xi32>
    %c0_i32_5 = arith.constant 0 : i32
    %12 = vector.broadcast %c0_i32_5 : i32 to vector<1x16xi32>
    %13 = arith.cmpi slt, %9, %12 : vector<1x16xi32>
    %c0_i32_6 = arith.constant 0 : i32
    %14 = arith.cmpi slt, %7, %c0_i32_6 : i32
    %15 = vector.broadcast %14 : i1 to vector<1x16xi1>
    %16 = vector.broadcast %15 : vector<1x16xi1> to vector<1x16xi1>
    %17 = arith.xori %13, %16 : vector<1x16xi1>
    %18 = arith.andi %17, %11 : vector<1x16xi1>
    %19 = vector.broadcast %7 : i32 to vector<1x16xi32>
    %20 = arith.addi %9, %19 : vector<1x16xi32>
    %21 = arith.select %18, %20, %9 : vector<1x16xi1>, vector<1x16xi32>
    %c0_i32_7 = arith.constant 0 : i32
    %22 = vector.broadcast %c0_i32_7 : i32 to vector<1x16xi32>
    %c0_i32_8 = arith.constant 0 : i32
    %23 = vector.broadcast %c0_i32_8 : i32 to vector<1x16xi32>
    %24 = arith.cmpi sge, %5, %23 : vector<1x16xi32>
    %c8_i32_9 = arith.constant 8 : i32
    %25 = vector.broadcast %c8_i32_9 : i32 to vector<1x16xi32>
    %26 = arith.cmpi slt, %5, %25 : vector<1x16xi32>
    %27 = arith.andi %24, %26 : vector<1x16xi1>
    %c0_10 = arith.constant 0 : index
    %28 = memref.load %arg0[%c0_10] : memref<2xi32, #tpu.memory_space<smem>>
    %29 = vector.broadcast %28 : i32 to vector<1x16xi32>
    %30 = arith.select %27, %29, %22 : vector<1x16xi1>, vector<1x16xi32>
    %c8_i32_11 = arith.constant 8 : i32
    %31 = vector.broadcast %c8_i32_11 : i32 to vector<1x16xi32>
    %32 = arith.cmpi sge, %5, %31 : vector<1x16xi32>
    %c16_i32 = arith.constant 16 : i32
    %33 = vector.broadcast %c16_i32 : i32 to vector<1x16xi32>
    %34 = arith.cmpi slt, %5, %33 : vector<1x16xi32>
    %35 = arith.andi %32, %34 : vector<1x16xi1>
    %c1 = arith.constant 1 : index
    %36 = memref.load %arg0[%c1] : memref<2xi32, #tpu.memory_space<smem>>
    %37 = vector.broadcast %36 : i32 to vector<1x16xi32>
    %38 = arith.select %35, %37, %30 : vector<1x16xi1>, vector<1x16xi32>
    %39 = arith.cmpi slt, %21, %38 : vector<1x16xi32>
    %cst_12 = arith.constant 0.000000e+00 : f32
    %cst_13 = arith.constant -1.000000e+09 : f32
    %40 = vector.broadcast %cst_12 : f32 to vector<1x16xf32>
    %41 = vector.broadcast %cst_13 : f32 to vector<1x16xf32>
    %42 = arith.select %39, %40, %41 : vector<1x16xi1>, vector<1x16xf32>
    %c48 = arith.constant 48 : index
    %c0_14 = arith.constant 0 : index
    %43 = vector.load %arg3[%c48, %c0_14] : memref<368x128xf32, #tpu.memory_space<vmem>>, vector<16x16xf32>
    %44 = vector.broadcast %42 : vector<1x16xf32> to vector<16x16xf32>
    %45 = arith.addf %43, %44 : vector<16x16xf32>
    %46 = vector.shape_cast %4 : vector<16x32xf32> to vector<1x16x32xf32>
    %47 = vector.shape_cast %46 : vector<1x16x32xf32> to vector<1x16x32xf32>
    %48 = vector.broadcast %47 : vector<1x16x32xf32> to vector<4x16x32xf32>
    %c4 = arith.constant 4 : index
    %c0_15 = arith.constant 0 : index
    %c0_16 = arith.constant 0 : index
    %c0_17 = arith.constant 0 : index
    %49 = vector.load %arg2[%c4, %c0_15, %c0_16, %c0_17] : memref<10x4x32x8xf32, #tpu.memory_space<vmem>>, vector<1x4x32x8xf32>
    %50 = vector.shape_cast %49 : vector<1x4x32x8xf32> to vector<4x32x8xf32>
    %51 = vector.extract_strided_slice %50 {offsets = [0, 0, 0], sizes = [4, 16, 8], strides = [1, 1, 1]} : vector<4x32x8xf32> to vector<4x16x8xf32>
    %c0_18 = arith.constant 0 : index
    %c0_19 = arith.constant 0 : index
    %c0_20 = arith.constant 0 : index
    %c0_21 = arith.constant 0 : index
    %52 = vector.load %arg2[%c0_18, %c0_19, %c0_20, %c0_21] : memref<10x4x32x8xf32, #tpu.memory_space<vmem>>, vector<1x4x32x8xf32>
    %53 = vector.shape_cast %52 : vector<1x4x32x8xf32> to vector<4x32x8xf32>
    %cst_22 = arith.constant dense<0.000000e+00> : vector<4x16x8xf32>
    %54 = tpu.matmul %48, %53, %cst_22 {dimension_numbers = #tpu.dot_dimension_numbers<[2], [1], [1], [2], [0, 0, 0, 1, 1, 2], [0], [0]>} : vector<4x16x32xf32>, vector<4x32x8xf32>, vector<4x16x8xf32> -> vector<4x16x8xf32>
    %55 = arith.addf %54, %51 : vector<4x16x8xf32>
    %c1_23 = arith.constant 1 : index
    %c0_24 = arith.constant 0 : index
    %c0_25 = arith.constant 0 : index
    %c0_26 = arith.constant 0 : index
    %56 = vector.load %arg2[%c1_23, %c0_24, %c0_25, %c0_26] : memref<10x4x32x8xf32, #tpu.memory_space<vmem>>, vector<1x4x32x8xf32>
    %57 = vector.shape_cast %56 : vector<1x4x32x8xf32> to vector<4x32x8xf32>
    %cst_27 = arith.constant dense<0.000000e+00> : vector<4x16x8xf32>
    %58 = tpu.matmul %48, %57, %cst_27 {dimension_numbers = #tpu.dot_dimension_numbers<[2], [1], [1], [2], [0, 0, 0, 1, 1, 2], [0], [0]>} : vector<4x16x32xf32>, vector<4x32x8xf32>, vector<4x16x8xf32> -> vector<4x16x8xf32>
    %c2 = arith.constant 2 : index
    %c0_28 = arith.constant 0 : index
    %c0_29 = arith.constant 0 : index
    %c0_30 = arith.constant 0 : index
    %59 = vector.load %arg2[%c2, %c0_28, %c0_29, %c0_30] : memref<10x4x32x8xf32, #tpu.memory_space<vmem>>, vector<1x4x32x8xf32>
    %60 = vector.shape_cast %59 : vector<1x4x32x8xf32> to vector<4x32x8xf32>
    %cst_31 = arith.constant dense<0.000000e+00> : vector<4x16x8xf32>
    %61 = tpu.matmul %48, %60, %cst_31 {dimension_numbers = #tpu.dot_dimension_numbers<[2], [1], [1], [2], [0, 0, 0, 1, 1, 2], [0], [0]>} : vector<4x16x32xf32>, vector<4x32x8xf32>, vector<4x16x8xf32> -> vector<4x16x8xf32>
    %cst_32 = arith.constant dense<0.000000e+00> : vector<4x16x16xf32>
    %62 = tpu.matmul %55, %58, %cst_32 {dimension_numbers = #tpu.dot_dimension_numbers<[2], [2], [1], [1], [0, 0, 0, 1, 1, 1], [0], [0]>} : vector<4x16x8xf32>, vector<4x16x8xf32>, vector<4x16x16xf32> -> vector<4x16x16xf32>
    %63 = vector.shape_cast %45 : vector<16x16xf32> to vector<1x16x16xf32>
    %64 = vector.broadcast %63 : vector<1x16x16xf32> to vector<4x16x16xf32>
    %65 = arith.addf %62, %64 : vector<4x16x16xf32>
    %cst_33 = arith.constant dense<0xFF800000> : vector<4x16xf32>
    %66 = vector.multi_reduction <maximumf>, %65, %cst_33 [2] : vector<4x16x16xf32> to vector<4x16xf32>
    %67 = vector.shape_cast %66 : vector<4x16xf32> to vector<4x16x1xf32>
    %68 = vector.broadcast %67 : vector<4x16x1xf32> to vector<4x16x16xf32>
    %69 = arith.subf %65, %68 : vector<4x16x16xf32>
    %70 = math.exp %69 : vector<4x16x16xf32>
    %cst_34 = arith.constant dense<0.000000e+00> : vector<4x16xf32>
    %71 = vector.multi_reduction <add>, %70, %cst_34 [2] : vector<4x16x16xf32> to vector<4x16xf32>
    %72 = vector.shape_cast %71 : vector<4x16xf32> to vector<4x16x1xf32>
    %73 = tpu.reciprocal %72 {approx = true} : vector<4x16x1xf32> -> vector<4x16x1xf32>
    %74 = vector.broadcast %73 : vector<4x16x1xf32> to vector<4x16x16xf32>
    %75 = arith.mulf %70, %74 : vector<4x16x16xf32>
    %cst_35 = arith.constant dense<0.000000e+00> : vector<4x16x8xf32>
    %76 = tpu.matmul %75, %61, %cst_35 {dimension_numbers = #tpu.dot_dimension_numbers<[2], [1], [1], [2], [0, 0, 0, 1, 1, 2], [0], [0]>} : vector<4x16x16xf32>, vector<4x16x8xf32>, vector<4x16x8xf32> -> vector<4x16x8xf32>
    %c3 = arith.constant 3 : index
    %c0_36 = arith.constant 0 : index
    %c0_37 = arith.constant 0 : index
    %c0_38 = arith.constant 0 : index
    %77 = vector.load %arg2[%c3, %c0_36, %c0_37, %c0_38] : memref<10x4x32x8xf32, #tpu.memory_space<vmem>>, vector<1x4x32x8xf32>
    %78 = vector.shape_cast %77 : vector<1x4x32x8xf32> to vector<4x32x8xf32>
    %cst_39 = arith.constant dense<0.000000e+00> : vector<4x16x32xf32>
    %79 = tpu.matmul %76, %78, %cst_39 {dimension_numbers = #tpu.dot_dimension_numbers<[2], [2], [1], [1], [0, 0, 0, 1, 1, 1], [0], [0]>} : vector<4x16x8xf32>, vector<4x32x8xf32>, vector<4x16x32xf32> -> vector<4x16x32xf32>
    %cst_40 = arith.constant dense<0.000000e+00> : vector<16x32xf32>
    %80 = vector.multi_reduction <add>, %79, %cst_40 [0] : vector<4x16x32xf32> to vector<16x32xf32>
    %c64 = arith.constant 64 : index
    %c0_41 = arith.constant 0 : index
    %81 = vector.load %arg3[%c64, %c0_41] : memref<368x128xf32, #tpu.memory_space<vmem>>, vector<1x32xf32>
    %82 = vector.broadcast %81 : vector<1x32xf32> to vector<16x32xf32>
    %83 = arith.addf %80, %82 : vector<16x32xf32>
    %84 = arith.addf %4, %83 : vector<16x32xf32>
    %c72 = arith.constant 72 : index
    %c0_42 = arith.constant 0 : index
    %85 = vector.load %arg3[%c72, %c0_42] : memref<368x128xf32, #tpu.memory_space<vmem>>, vector<1x32xf32>
    %c80 = arith.constant 80 : index
    %c0_43 = arith.constant 0 : index
    %86 = vector.load %arg3[%c80, %c0_43] : memref<368x128xf32, #tpu.memory_space<vmem>>, vector<1x32xf32>
    %cst_44 = arith.constant dense<0.000000e+00> : vector<16xf32>
    %87 = vector.multi_reduction <add>, %84, %cst_44 [1] : vector<16x32xf32> to vector<16xf32>
    %88 = vector.shape_cast %87 : vector<16xf32> to vector<16x1xf32>
    %cst_45 = arith.constant 3.200000e+01 : f32
    %89 = vector.broadcast %cst_45 : f32 to vector<16x1xf32>
    %90 = arith.divf %88, %89 : vector<16x1xf32>
    %91 = vector.broadcast %90 : vector<16x1xf32> to vector<16x32xf32>
    %92 = arith.subf %84, %91 : vector<16x32xf32>
    %93 = arith.mulf %92, %92 : vector<16x32xf32>
    %cst_46 = arith.constant dense<0.000000e+00> : vector<16xf32>
    %94 = vector.multi_reduction <add>, %93, %cst_46 [1] : vector<16x32xf32> to vector<16xf32>
    %95 = vector.shape_cast %94 : vector<16xf32> to vector<16x1xf32>
    %cst_47 = arith.constant 3.200000e+01 : f32
    %96 = vector.broadcast %cst_47 : f32 to vector<16x1xf32>
    %97 = arith.divf %95, %96 : vector<16x1xf32>
    %cst_48 = arith.constant 9.99999974E-6 : f32
    %98 = vector.broadcast %cst_48 : f32 to vector<16x1xf32>
    %99 = arith.addf %97, %98 : vector<16x1xf32>
    %100 = math.rsqrt %99 : vector<16x1xf32>
    %101 = vector.broadcast %100 : vector<16x1xf32> to vector<16x32xf32>
    %102 = arith.mulf %92, %101 : vector<16x32xf32>
    %103 = vector.broadcast %85 : vector<1x32xf32> to vector<16x32xf32>
    %104 = arith.mulf %102, %103 : vector<16x32xf32>
    %105 = vector.broadcast %86 : vector<1x32xf32> to vector<16x32xf32>
    %106 = arith.addf %104, %105 : vector<16x32xf32>
    %c120 = arith.constant 120 : index
    %c0_49 = arith.constant 0 : index
    %107 = vector.load %arg3[%c120, %c0_49] : memref<368x128xf32, #tpu.memory_space<vmem>>, vector<32x64xf32>
    %cst_50 = arith.constant dense<0.000000e+00> : vector<16x64xf32>
    %108 = tpu.matmul %106, %107, %cst_50 {dimension_numbers = #tpu.dot_dimension_numbers<[1], [0], [0], [1], [0, 0, 1, 1], [], []>} : vector<16x32xf32>, vector<32x64xf32>, vector<16x64xf32> -> vector<16x64xf32>
    %c104 = arith.constant 104 : index
    %c0_51 = arith.constant 0 : index
    %109 = vector.load %arg3[%c104, %c0_51] : memref<368x128xf32, #tpu.memory_space<vmem>>, vector<1x64xf32>
    %110 = vector.broadcast %109 : vector<1x64xf32> to vector<16x64xf32>
    %111 = arith.addf %108, %110 : vector<16x64xf32>
    %cst_52 = arith.constant 0.000000e+00 : f32
    %112 = vector.broadcast %cst_52 : f32 to vector<16x64xf32>
    %113 = arith.maximumf %111, %112 : vector<16x64xf32>
    %c152 = arith.constant 152 : index
    %c0_53 = arith.constant 0 : index
    %114 = vector.load %arg3[%c152, %c0_53] : memref<368x128xf32, #tpu.memory_space<vmem>>, vector<64x32xf32>
    %cst_54 = arith.constant dense<0.000000e+00> : vector<16x32xf32>
    %115 = tpu.matmul %113, %114, %cst_54 {dimension_numbers = #tpu.dot_dimension_numbers<[1], [0], [0], [1], [0, 0, 1, 1], [], []>} : vector<16x64xf32>, vector<64x32xf32>, vector<16x32xf32> -> vector<16x32xf32>
    %c112 = arith.constant 112 : index
    %c0_55 = arith.constant 0 : index
    %116 = vector.load %arg3[%c112, %c0_55] : memref<368x128xf32, #tpu.memory_space<vmem>>, vector<1x32xf32>
    %117 = vector.broadcast %116 : vector<1x32xf32> to vector<16x32xf32>
    %118 = arith.addf %115, %117 : vector<16x32xf32>
    %119 = arith.addf %106, %118 : vector<16x32xf32>
    %c88 = arith.constant 88 : index
    %c0_56 = arith.constant 0 : index
    %120 = vector.load %arg3[%c88, %c0_56] : memref<368x128xf32, #tpu.memory_space<vmem>>, vector<1x32xf32>
    %c96 = arith.constant 96 : index
    %c0_57 = arith.constant 0 : index
    %121 = vector.load %arg3[%c96, %c0_57] : memref<368x128xf32, #tpu.memory_space<vmem>>, vector<1x32xf32>
    %cst_58 = arith.constant dense<0.000000e+00> : vector<16xf32>
    %122 = vector.multi_reduction <add>, %119, %cst_58 [1] : vector<16x32xf32> to vector<16xf32>
    %123 = vector.shape_cast %122 : vector<16xf32> to vector<16x1xf32>
    %cst_59 = arith.constant 3.200000e+01 : f32
    %124 = vector.broadcast %cst_59 : f32 to vector<16x1xf32>
    %125 = arith.divf %123, %124 : vector<16x1xf32>
    %126 = vector.broadcast %125 : vector<16x1xf32> to vector<16x32xf32>
    %127 = arith.subf %119, %126 : vector<16x32xf32>
    %128 = arith.mulf %127, %127 : vector<16x32xf32>
    %cst_60 = arith.constant dense<0.000000e+00> : vector<16xf32>
    %129 = vector.multi_reduction <add>, %128, %cst_60 [1] : vector<16x32xf32> to vector<16xf32>
    %130 = vector.shape_cast %129 : vector<16xf32> to vector<16x1xf32>
    %cst_61 = arith.constant 3.200000e+01 : f32
    %131 = vector.broadcast %cst_61 : f32 to vector<16x1xf32>
    %132 = arith.divf %130, %131 : vector<16x1xf32>
    %cst_62 = arith.constant 9.99999974E-6 : f32
    %133 = vector.broadcast %cst_62 : f32 to vector<16x1xf32>
    %134 = arith.addf %132, %133 : vector<16x1xf32>
    %135 = math.rsqrt %134 : vector<16x1xf32>
    %136 = vector.broadcast %135 : vector<16x1xf32> to vector<16x32xf32>
    %137 = arith.mulf %127, %136 : vector<16x32xf32>
    %138 = vector.broadcast %120 : vector<1x32xf32> to vector<16x32xf32>
    %139 = arith.mulf %137, %138 : vector<16x32xf32>
    %140 = vector.broadcast %121 : vector<1x32xf32> to vector<16x32xf32>
    %141 = arith.addf %139, %140 : vector<16x32xf32>
    %142 = vector.shape_cast %141 : vector<16x32xf32> to vector<1x16x32xf32>
    %143 = vector.shape_cast %142 : vector<1x16x32xf32> to vector<1x16x32xf32>
    %144 = vector.broadcast %143 : vector<1x16x32xf32> to vector<4x16x32xf32>
    %c9 = arith.constant 9 : index
    %c0_63 = arith.constant 0 : index
    %c0_64 = arith.constant 0 : index
    %c0_65 = arith.constant 0 : index
    %145 = vector.load %arg2[%c9, %c0_63, %c0_64, %c0_65] : memref<10x4x32x8xf32, #tpu.memory_space<vmem>>, vector<1x4x32x8xf32>
    %146 = vector.shape_cast %145 : vector<1x4x32x8xf32> to vector<4x32x8xf32>
    %147 = vector.extract_strided_slice %146 {offsets = [0, 0, 0], sizes = [4, 16, 8], strides = [1, 1, 1]} : vector<4x32x8xf32> to vector<4x16x8xf32>
    %c5 = arith.constant 5 : index
    %c0_66 = arith.constant 0 : index
    %c0_67 = arith.constant 0 : index
    %c0_68 = arith.constant 0 : index
    %148 = vector.load %arg2[%c5, %c0_66, %c0_67, %c0_68] : memref<10x4x32x8xf32, #tpu.memory_space<vmem>>, vector<1x4x32x8xf32>
    %149 = vector.shape_cast %148 : vector<1x4x32x8xf32> to vector<4x32x8xf32>
    %cst_69 = arith.constant dense<0.000000e+00> : vector<4x16x8xf32>
    %150 = tpu.matmul %144, %149, %cst_69 {dimension_numbers = #tpu.dot_dimension_numbers<[2], [1], [1], [2], [0, 0, 0, 1, 1, 2], [0], [0]>} : vector<4x16x32xf32>, vector<4x32x8xf32>, vector<4x16x8xf32> -> vector<4x16x8xf32>
    %151 = arith.addf %150, %147 : vector<4x16x8xf32>
    %c6 = arith.constant 6 : index
    %c0_70 = arith.constant 0 : index
    %c0_71 = arith.constant 0 : index
    %c0_72 = arith.constant 0 : index
    %152 = vector.load %arg2[%c6, %c0_70, %c0_71, %c0_72] : memref<10x4x32x8xf32, #tpu.memory_space<vmem>>, vector<1x4x32x8xf32>
    %153 = vector.shape_cast %152 : vector<1x4x32x8xf32> to vector<4x32x8xf32>
    %cst_73 = arith.constant dense<0.000000e+00> : vector<4x16x8xf32>
    %154 = tpu.matmul %144, %153, %cst_73 {dimension_numbers = #tpu.dot_dimension_numbers<[2], [1], [1], [2], [0, 0, 0, 1, 1, 2], [0], [0]>} : vector<4x16x32xf32>, vector<4x32x8xf32>, vector<4x16x8xf32> -> vector<4x16x8xf32>
    %c7 = arith.constant 7 : index
    %c0_74 = arith.constant 0 : index
    %c0_75 = arith.constant 0 : index
    %c0_76 = arith.constant 0 : index
    %155 = vector.load %arg2[%c7, %c0_74, %c0_75, %c0_76] : memref<10x4x32x8xf32, #tpu.memory_space<vmem>>, vector<1x4x32x8xf32>
    %156 = vector.shape_cast %155 : vector<1x4x32x8xf32> to vector<4x32x8xf32>
    %cst_77 = arith.constant dense<0.000000e+00> : vector<4x16x8xf32>
    %157 = tpu.matmul %144, %156, %cst_77 {dimension_numbers = #tpu.dot_dimension_numbers<[2], [1], [1], [2], [0, 0, 0, 1, 1, 2], [0], [0]>} : vector<4x16x32xf32>, vector<4x32x8xf32>, vector<4x16x8xf32> -> vector<4x16x8xf32>
    %cst_78 = arith.constant dense<0.000000e+00> : vector<4x16x16xf32>
    %158 = tpu.matmul %151, %154, %cst_78 {dimension_numbers = #tpu.dot_dimension_numbers<[2], [2], [1], [1], [0, 0, 0, 1, 1, 1], [0], [0]>} : vector<4x16x8xf32>, vector<4x16x8xf32>, vector<4x16x16xf32> -> vector<4x16x16xf32>
    %159 = vector.shape_cast %45 : vector<16x16xf32> to vector<1x16x16xf32>
    %160 = vector.broadcast %159 : vector<1x16x16xf32> to vector<4x16x16xf32>
    %161 = arith.addf %158, %160 : vector<4x16x16xf32>
    %cst_79 = arith.constant dense<0xFF800000> : vector<4x16xf32>
    %162 = vector.multi_reduction <maximumf>, %161, %cst_79 [2] : vector<4x16x16xf32> to vector<4x16xf32>
    %163 = vector.shape_cast %162 : vector<4x16xf32> to vector<4x16x1xf32>
    %164 = vector.broadcast %163 : vector<4x16x1xf32> to vector<4x16x16xf32>
    %165 = arith.subf %161, %164 : vector<4x16x16xf32>
    %166 = math.exp %165 : vector<4x16x16xf32>
    %cst_80 = arith.constant dense<0.000000e+00> : vector<4x16xf32>
    %167 = vector.multi_reduction <add>, %166, %cst_80 [2] : vector<4x16x16xf32> to vector<4x16xf32>
    %168 = vector.shape_cast %167 : vector<4x16xf32> to vector<4x16x1xf32>
    %169 = tpu.reciprocal %168 {approx = true} : vector<4x16x1xf32> -> vector<4x16x1xf32>
    %170 = vector.broadcast %169 : vector<4x16x1xf32> to vector<4x16x16xf32>
    %171 = arith.mulf %166, %170 : vector<4x16x16xf32>
    %cst_81 = arith.constant dense<0.000000e+00> : vector<4x16x8xf32>
    %172 = tpu.matmul %171, %157, %cst_81 {dimension_numbers = #tpu.dot_dimension_numbers<[2], [1], [1], [2], [0, 0, 0, 1, 1, 2], [0], [0]>} : vector<4x16x16xf32>, vector<4x16x8xf32>, vector<4x16x8xf32> -> vector<4x16x8xf32>
    %c8_82 = arith.constant 8 : index
    %c0_83 = arith.constant 0 : index
    %c0_84 = arith.constant 0 : index
    %c0_85 = arith.constant 0 : index
    %173 = vector.load %arg2[%c8_82, %c0_83, %c0_84, %c0_85] : memref<10x4x32x8xf32, #tpu.memory_space<vmem>>, vector<1x4x32x8xf32>
    %174 = vector.shape_cast %173 : vector<1x4x32x8xf32> to vector<4x32x8xf32>
    %cst_86 = arith.constant dense<0.000000e+00> : vector<4x16x32xf32>
    %175 = tpu.matmul %172, %174, %cst_86 {dimension_numbers = #tpu.dot_dimension_numbers<[2], [2], [1], [1], [0, 0, 0, 1, 1, 1], [0], [0]>} : vector<4x16x8xf32>, vector<4x32x8xf32>, vector<4x16x32xf32> -> vector<4x16x32xf32>
    %cst_87 = arith.constant dense<0.000000e+00> : vector<16x32xf32>
    %176 = vector.multi_reduction <add>, %175, %cst_87 [0] : vector<4x16x32xf32> to vector<16x32xf32>
    %c216 = arith.constant 216 : index
    %c0_88 = arith.constant 0 : index
    %177 = vector.load %arg3[%c216, %c0_88] : memref<368x128xf32, #tpu.memory_space<vmem>>, vector<1x32xf32>
    %178 = vector.broadcast %177 : vector<1x32xf32> to vector<16x32xf32>
    %179 = arith.addf %176, %178 : vector<16x32xf32>
    %180 = arith.addf %141, %179 : vector<16x32xf32>
    %c224 = arith.constant 224 : index
    %c0_89 = arith.constant 0 : index
    %181 = vector.load %arg3[%c224, %c0_89] : memref<368x128xf32, #tpu.memory_space<vmem>>, vector<1x32xf32>
    %c232 = arith.constant 232 : index
    %c0_90 = arith.constant 0 : index
    %182 = vector.load %arg3[%c232, %c0_90] : memref<368x128xf32, #tpu.memory_space<vmem>>, vector<1x32xf32>
    %cst_91 = arith.constant dense<0.000000e+00> : vector<16xf32>
    %183 = vector.multi_reduction <add>, %180, %cst_91 [1] : vector<16x32xf32> to vector<16xf32>
    %184 = vector.shape_cast %183 : vector<16xf32> to vector<16x1xf32>
    %cst_92 = arith.constant 3.200000e+01 : f32
    %185 = vector.broadcast %cst_92 : f32 to vector<16x1xf32>
    %186 = arith.divf %184, %185 : vector<16x1xf32>
    %187 = vector.broadcast %186 : vector<16x1xf32> to vector<16x32xf32>
    %188 = arith.subf %180, %187 : vector<16x32xf32>
    %189 = arith.mulf %188, %188 : vector<16x32xf32>
    %cst_93 = arith.constant dense<0.000000e+00> : vector<16xf32>
    %190 = vector.multi_reduction <add>, %189, %cst_93 [1] : vector<16x32xf32> to vector<16xf32>
    %191 = vector.shape_cast %190 : vector<16xf32> to vector<16x1xf32>
    %cst_94 = arith.constant 3.200000e+01 : f32
    %192 = vector.broadcast %cst_94 : f32 to vector<16x1xf32>
    %193 = arith.divf %191, %192 : vector<16x1xf32>
    %cst_95 = arith.constant 9.99999974E-6 : f32
    %194 = vector.broadcast %cst_95 : f32 to vector<16x1xf32>
    %195 = arith.addf %193, %194 : vector<16x1xf32>
    %196 = math.rsqrt %195 : vector<16x1xf32>
    %197 = vector.broadcast %196 : vector<16x1xf32> to vector<16x32xf32>
    %198 = arith.mulf %188, %197 : vector<16x32xf32>
    %199 = vector.broadcast %181 : vector<1x32xf32> to vector<16x32xf32>
    %200 = arith.mulf %198, %199 : vector<16x32xf32>
    %201 = vector.broadcast %182 : vector<1x32xf32> to vector<16x32xf32>
    %202 = arith.addf %200, %201 : vector<16x32xf32>
    %c272 = arith.constant 272 : index
    %c0_96 = arith.constant 0 : index
    %203 = vector.load %arg3[%c272, %c0_96] : memref<368x128xf32, #tpu.memory_space<vmem>>, vector<32x64xf32>
    %cst_97 = arith.constant dense<0.000000e+00> : vector<16x64xf32>
    %204 = tpu.matmul %202, %203, %cst_97 {dimension_numbers = #tpu.dot_dimension_numbers<[1], [0], [0], [1], [0, 0, 1, 1], [], []>} : vector<16x32xf32>, vector<32x64xf32>, vector<16x64xf32> -> vector<16x64xf32>
    %c256 = arith.constant 256 : index
    %c0_98 = arith.constant 0 : index
    %205 = vector.load %arg3[%c256, %c0_98] : memref<368x128xf32, #tpu.memory_space<vmem>>, vector<1x64xf32>
    %206 = vector.broadcast %205 : vector<1x64xf32> to vector<16x64xf32>
    %207 = arith.addf %204, %206 : vector<16x64xf32>
    %cst_99 = arith.constant 0.000000e+00 : f32
    %208 = vector.broadcast %cst_99 : f32 to vector<16x64xf32>
    %209 = arith.maximumf %207, %208 : vector<16x64xf32>
    %c304 = arith.constant 304 : index
    %c0_100 = arith.constant 0 : index
    %210 = vector.load %arg3[%c304, %c0_100] : memref<368x128xf32, #tpu.memory_space<vmem>>, vector<64x32xf32>
    %cst_101 = arith.constant dense<0.000000e+00> : vector<16x32xf32>
    %211 = tpu.matmul %209, %210, %cst_101 {dimension_numbers = #tpu.dot_dimension_numbers<[1], [0], [0], [1], [0, 0, 1, 1], [], []>} : vector<16x64xf32>, vector<64x32xf32>, vector<16x32xf32> -> vector<16x32xf32>
    %c264 = arith.constant 264 : index
    %c0_102 = arith.constant 0 : index
    %212 = vector.load %arg3[%c264, %c0_102] : memref<368x128xf32, #tpu.memory_space<vmem>>, vector<1x32xf32>
    %213 = vector.broadcast %212 : vector<1x32xf32> to vector<16x32xf32>
    %214 = arith.addf %211, %213 : vector<16x32xf32>
    %215 = arith.addf %202, %214 : vector<16x32xf32>
    %c240 = arith.constant 240 : index
    %c0_103 = arith.constant 0 : index
    %216 = vector.load %arg3[%c240, %c0_103] : memref<368x128xf32, #tpu.memory_space<vmem>>, vector<1x32xf32>
    %c248 = arith.constant 248 : index
    %c0_104 = arith.constant 0 : index
    %217 = vector.load %arg3[%c248, %c0_104] : memref<368x128xf32, #tpu.memory_space<vmem>>, vector<1x32xf32>
    %cst_105 = arith.constant dense<0.000000e+00> : vector<16xf32>
    %218 = vector.multi_reduction <add>, %215, %cst_105 [1] : vector<16x32xf32> to vector<16xf32>
    %219 = vector.shape_cast %218 : vector<16xf32> to vector<16x1xf32>
    %cst_106 = arith.constant 3.200000e+01 : f32
    %220 = vector.broadcast %cst_106 : f32 to vector<16x1xf32>
    %221 = arith.divf %219, %220 : vector<16x1xf32>
    %222 = vector.broadcast %221 : vector<16x1xf32> to vector<16x32xf32>
    %223 = arith.subf %215, %222 : vector<16x32xf32>
    %224 = arith.mulf %223, %223 : vector<16x32xf32>
    %cst_107 = arith.constant dense<0.000000e+00> : vector<16xf32>
    %225 = vector.multi_reduction <add>, %224, %cst_107 [1] : vector<16x32xf32> to vector<16xf32>
    %226 = vector.shape_cast %225 : vector<16xf32> to vector<16x1xf32>
    %cst_108 = arith.constant 3.200000e+01 : f32
    %227 = vector.broadcast %cst_108 : f32 to vector<16x1xf32>
    %228 = arith.divf %226, %227 : vector<16x1xf32>
    %cst_109 = arith.constant 9.99999974E-6 : f32
    %229 = vector.broadcast %cst_109 : f32 to vector<16x1xf32>
    %230 = arith.addf %228, %229 : vector<16x1xf32>
    %231 = math.rsqrt %230 : vector<16x1xf32>
    %232 = vector.broadcast %231 : vector<16x1xf32> to vector<16x32xf32>
    %233 = arith.mulf %223, %232 : vector<16x32xf32>
    %234 = vector.broadcast %216 : vector<1x32xf32> to vector<16x32xf32>
    %235 = arith.mulf %233, %234 : vector<16x32xf32>
    %236 = vector.broadcast %217 : vector<1x32xf32> to vector<16x32xf32>
    %237 = arith.addf %235, %236 : vector<16x32xf32>
    %c24 = arith.constant 24 : index
    %c0_110 = arith.constant 0 : index
    %238 = vector.load %arg3[%c24, %c0_110] : memref<368x128xf32, #tpu.memory_space<vmem>>, vector<2x16xf32>
    %cst_111 = arith.constant dense<0.000000e+00> : vector<2x32xf32>
    %239 = tpu.matmul %238, %237, %cst_111 {dimension_numbers = #tpu.dot_dimension_numbers<[1], [0], [0], [1], [0, 0, 1, 1], [], []>} : vector<2x16xf32>, vector<16x32xf32>, vector<2x32xf32> -> vector<2x32xf32>
    %c32 = arith.constant 32 : index
    %c0_112 = arith.constant 0 : index
    %240 = vector.load %arg3[%c32, %c0_112] : memref<368x128xf32, #tpu.memory_space<vmem>>, vector<1x32xf32>
    %cst_113 = arith.constant dense<0.000000e+00> : vector<1x2xf32>
    %241 = tpu.matmul %240, %239, %cst_113 {dimension_numbers = #tpu.dot_dimension_numbers<[1], [1], [0], [0], [0, 0, 1, 0], [], []>} : vector<1x32xf32>, vector<2x32xf32>, vector<1x2xf32> -> vector<1x2xf32>
    %c40 = arith.constant 40 : index
    %c0_114 = arith.constant 0 : index
    %242 = vector.load %arg3[%c40, %c0_114] : memref<368x128xf32, #tpu.memory_space<vmem>>, vector<1x1xf32>
    %243 = vector.broadcast %242 : vector<1x1xf32> to vector<1x2xf32>
    %244 = arith.addf %241, %243 : vector<1x2xf32>
    %245 = arith.negf %244 : vector<1x2xf32>
    %246 = math.exp %245 : vector<1x2xf32>
    %cst_115 = arith.constant 1.000000e+00 : f32
    %247 = vector.broadcast %cst_115 : f32 to vector<1x2xf32>
    %248 = arith.addf %247, %246 : vector<1x2xf32>
    %249 = arith.divf %247, %248 : vector<1x2xf32>
    %c0_116 = arith.constant 0 : index
    %c0_117 = arith.constant 0 : index
    %250 = vector.load %arg4[%c0_116, %c0_117] : memref<1x2xf32, #tpu.memory_space<vmem>>, vector<1x2xf32>
    tpu.vector_store %arg4[%c0_116, %c0_117], %249 {strides = array<i32>} : memref<1x2xf32, #tpu.memory_space<vmem>>, vector<1x2xf32>,
    return
  }
}

</mosaic_0001>

<bundles_post_ra>
// kernel: model_forward.1
= control target key start
LH: loop header
LB: loop body
LE: loop exit
PB: predicated region body
PF: predicated region fallthrough
CT: control target
= control target key end

     0   :  { %9 = vsyncpa [#allocation4], 0  ;;  %s7410_s0 = inlined_call_operand.vmem [shape: s32[2], index: 0, kind: input, shape index: {}]   ;;  %s7411_s1 = inlined_call_operand.vmem [shape: f32[16,4], index: 1, kind: input, shape index: {}]   ;;  %s7412_s2 = inlined_call_operand.vmem [shape: f32[10,4,32,8], index: 2, kind: input, shape index: {}]   ;;  %s7413_s3 = inlined_call_operand.vmem [shape: f32[368,128], index: 3, kind: input, shape index: {}]   ;;  %s7414_s4 = inlined_call_operand.hbm [shape: f32[1,2], index: 4, kind: output, shape index: {}]  }
   0x1   :  { %10 = vsyncpa [#allocation3], 0  ;;  %s17_s17 = sshll.u32 %s7410_s0, 4  ;;  %s18_s17 = int_to_ptr.vmem [resolvable:$true] %s17_s17 }
   0x2   :  { %s6380_s18 = scalar_lea.vmem %s18_s17, 16  ;;  %p6385_p1 = scmp.lt.s32.totalorder %s18_s17, %s18_s17 }
   0x3   :  { %p6381_p0 = scmp.ne.s32.totalorder %s18_s17, %s6380_s18  ;;  %p6386_p2 = scmp.lt.s32.totalorder %s6380_s18, %s6380_s18 }
   0x5   :  { %p6387_p3 = por %p6386_p2, %p6385_p1 }
   0x7   :  { %p6388_p4 = pnand %p6387_p3, %p6381_p0 }
   0x9   :  { %6391 = shalt.err (!%p6388_p4)
}
   0xa   :  { %s6416_s19 = smov [#allocation2]  }
   0xb   :  { %20 = dma.vmem_to_smem %s18_s17, 16, %s6416_s19, [#allocation4]  }
   0xc   :  { %6412 = dma.done.wait [#allocation4], 16  }
   0xd   :  { %6413 = vsyncadd [#allocation4], 4294967280 }
   0xe   :  { %30 = sfence }
   0xf   :  { %v33_v0 = vld [vmem:[%s7413_s3] sm:$0xf]  ;;  %vm43_vm0 = vcmask 1043456   ;;  %vm36_vm1 = vcmask 31744   ;;  %v32_v2 = vld [vmem:[%s7411_s1 + $0x8] sm:$0xff]  ;;  %v166_v3 = vld [vmem:[%s7412_s2 + $0x18] sm:$0xff] }
  0x10   :  { %v31_v1 = vld [vmem:[%s7411_s1] sm:$0xff]  ;;  %5748 = vmatprep.subr.msk.mxu0 %vm43_vm0, %v33_v0  ;;  %v170_v4 = vld [vmem:[%s7412_s2 + $0x38] sm:$0xff]  ;;  %5753 = vmatprep.subr.mxu1 %v166_v3  ;;  %v165_v5 = vld [vmem:[%s7412_s2 + $0x10] sm:$0xff]  ;;  %vm179_vm2 = vcmask 261120   ;;  %vm1120_vm3 = vcmask 64512   ;;  %s139_s29 = sld [smem:[#allocation2]] }
  0x11   :  { %5750 = vmatprep.mubr.msk.f32.mxu0 %vm36_vm1, %v31_v1  ;;  %5749 = vmatpush3.msk.msra.mxu0 %vm43_vm0, %v33_v0  ;;  %v169_v6 = vld [vmem:[%s7412_s2 + $0x30] sm:$0xff]  ;;  %v164_v7 = vld [vmem:[%s7412_s2 + $0x8] sm:$0xff]  ;;  %v163_v9 = vld [vmem:[%s7412_s2] sm:$0xff]  ;;  %s5153_s30 = sld [smem:[#allocation2 + $0x1]]  ;;  %vm1469_vm9 = vcmask 130048   ;;  %vm2440_vm10 = vcmask 523264  }
  0x12   :  { %5751 = vmatmul.mubr.msk.f32.vlgmr.msra.gmra.mxu0 %vm36_vm1, %v32_v2  ;;  %5764 = vmatprep.subr.mxu0 %v170_v4  ;;  %v168_v8 = vld [vmem:[%s7412_s2 + $0x28] sm:$0xff]  ;;  %v167_v10 = vld [vmem:[%s7412_s2 + $0x20] sm:$0xff]  ;;  %v174_v11 = vld [vmem:[%s7412_s2 + $0x58] sm:$0xff]  ;;  %vm6419_vm11 = vmmov 0   ;;  %s6421_s12 = smov [#allocation5]   ;;  %vm5133_vm12 = vcmask 8192  }
  0x13   :  { %5754 = vmatpush3.msra.mxu1 %v166_v3  ;;  %5765 = vmatpush3.msra.mxu0 %v170_v4  ;;  %v178_v12 = vld [vmem:[%s7412_s2 + $0x78] sm:$0xff]  ;;  %v34_v14 = vld [vmem:[%s7413_s3 + $0x8] sm:$0xff]  ;;  %v35_v15 = vld [vmem:[%s7413_s3 + $0x10] sm:$0xff]  ;;  %s5141_s13 = sshll.u32 %s6421_s12, 4  ;;  %s5142_s13 = int_to_ptr.vmem [resolvable:$true] %s5141_s13 }
  0x14   :  { %5755 = vmatprep.subr.mxu1 %v165_v5  ;;  %5766 = vmatprep.subr.mxu0 %v169_v6  ;;  %v173_v19 = vld [vmem:[%s7412_s2 + $0x50] sm:$0xff]  ;;  %v172_v21 = vld [vmem:[%s7412_s2 + $0x48] sm:$0xff]  ;;  %v171_v23 = vld [vmem:[%s7412_s2 + $0x40] sm:$0xff]  ;;  %s6392_s14 = scalar_lea.vmem %s5142_s13, 16  ;;  %p6397_p6 = scmp.lt.s32.totalorder %s5142_s13, %s5142_s13 }
  0x15   :  { %5756 = vmatpush3.msra.mxu1 %v165_v5  ;;  %5767 = vmatpush3.msra.mxu0 %v169_v6  ;;  %v177_v20 = vld [vmem:[%s7412_s2 + $0x70] sm:$0xff]  ;;  %v176_v22 = vld [vmem:[%s7412_s2 + $0x68] sm:$0xff]  ;;  %v175_v24 = vld [vmem:[%s7412_s2 + $0x60] sm:$0xff]  ;;  %p6393_p5 = scmp.ne.s32.totalorder %s5142_s13, %s6392_s14 }
  0x16   :  { %5757 = vmatprep.subr.mxu1 %v164_v7  ;;  %5768 = vmatprep.subr.mxu0 %v168_v8  ;;  %v5173_v25 = vld [vmem:[%s7412_s2 + $0x98] sm:$0xff]  ;;  %v5172_v27 = vld [vmem:[%s7412_s2 + $0x90] sm:$0xff]  ;;  %v5171_v29 = vld [vmem:[%s7412_s2 + $0x88] sm:$0xff] }
  0x17   :  { %5758 = vmatpush3.msra.mxu1 %v164_v7  ;;  %5769 = vmatpush3.msra.mxu0 %v168_v8  ;;  %v5177_v26 = vld [vmem:[%s7412_s2 + $0xb8] sm:$0xff]  ;;  %v5176_v28 = vld [vmem:[%s7412_s2 + $0xb0] sm:$0xff]  ;;  %v5175_v30 = vld [vmem:[%s7412_s2 + $0xa8] sm:$0xff] }
  0x18   :  { %5759 = vmatprep.subr.mxu1 %v163_v9  ;;  %5770 = vmatprep.subr.mxu0 %v167_v10  ;;  %v5170_v31 = vld [vmem:[%s7412_s2 + $0x80] sm:$0xff]  ;;  %v5181_v33 = vld [vmem:[%s7412_s2 + $0xd8] sm:$0xff]  ;;  %v5180_v35 = vld [vmem:[%s7412_s2 + $0xd0] sm:$0xff] }
  0x19   :  { %5760 = vmatpush3.msra.mxu1 %v163_v9  ;;  %5771 = vmatpush3.msra.mxu0 %v167_v10  ;;  %v5174_v32 = vld [vmem:[%s7412_s2 + $0xa0] sm:$0xff]  ;;  %v5185_v34 = vld [vmem:[%s7412_s2 + $0xf8] sm:$0xff]  ;;  %v5184_v36 = vld [vmem:[%s7412_s2 + $0xf0] sm:$0xff] }
  0x1a   :  { %5775 = vmatprep.subr.mxu1 %v174_v11  ;;  %5786 = vmatprep.subr.mxu0 %v178_v12  ;;  %v5179_v37 = vld [vmem:[%s7412_s2 + $0xc8] sm:$0xff]  ;;  %v5178_v39 = vld [vmem:[%s7412_s2 + $0xc0] sm:$0xff]  ;;  %v5197_v41 = vld [vmem:[%s7412_s2 + $0x118] sm:$0xff] }
  0x1b   :  { %v5183_v38 = vld [vmem:[%s7412_s2 + $0xe8] sm:$0xff]  ;;  %v5182_v40 = vld [vmem:[%s7412_s2 + $0xe0] sm:$0xff]  ;;  %v5201_v42 = vld [vmem:[%s7412_s2 + $0x138] sm:$0xff] }
  0x1c   :  { %v5196_v43 = vld [vmem:[%s7412_s2 + $0x110] sm:$0xff]  ;;  %v5195_v45 = vld [vmem:[%s7412_s2 + $0x108] sm:$0xff]  ;;  %v5194_v47 = vld [vmem:[%s7412_s2 + $0x100] sm:$0xff] }
  0x1d   :  { %v5200_v44 = vld [vmem:[%s7412_s2 + $0x130] sm:$0xff]  ;;  %v5199_v46 = vld [vmem:[%s7412_s2 + $0x128] sm:$0xff]  ;;  %v5198_v48 = vld [vmem:[%s7412_s2 + $0x120] sm:$0xff] }
  0x1e   :  { %v5205_v49 = vld [vmem:[%s7412_s2 + $0x158] sm:$0xff]  ;;  %v5204_v51 = vld [vmem:[%s7412_s2 + $0x150] sm:$0xff]  ;;  %v5203_v53 = vld [vmem:[%s7412_s2 + $0x148] sm:$0xff] }
  0x1f   :  { %v5209_v50 = vld [vmem:[%s7412_s2 + $0x178] sm:$0xff]  ;;  %v5208_v52 = vld [vmem:[%s7412_s2 + $0x170] sm:$0xff]  ;;  %v5207_v54 = vld [vmem:[%s7412_s2 + $0x168] sm:$0xff] }
  0x20   :  { %v5202_v55 = vld [vmem:[%s7412_s2 + $0x140] sm:$0xff]  ;;  %v5155_v9 = vld [vmem:[%s7412_s2 + $0x208] sm:$0xff] }
  0x21   :  { %v5206_v56 = vld [vmem:[%s7412_s2 + $0x160] sm:$0xff]  ;;  %v5157_v10 = vld [vmem:[%s7412_s2 + $0x228] sm:$0xff] }
  0x22   :  { %v5154_v59 = vld [vmem:[%s7412_s2 + $0x200] sm:$0xff] }
  0x23   :  { %v5156_v60 = vld [vmem:[%s7412_s2 + $0x220] sm:$0xff] }
  0xd2   :  { %v5752_v13 = vpop.f32.mrf.mxu0 }
  0xd3   :  { %v6497_v18 = vadd.f32 %v5752_v13, %v35_v15 }
  0xd4   :  { %v113_v16 = vpop.f32.mrf.mxu0 }
  0xd5   :  { %v6495_v17 = vadd.f32 %v113_v16, %v34_v14 }
  0xd7   :  { %5761 = vmatprep.mubr.msk.f32.mxu1 %vm179_vm2, %v6495_v17  ;;  %5772 = vmatprep.mubr.msk.f32.mxu0 %vm179_vm2, %v6495_v17 }
  0xd8   :  { %5762 = vmatmul.mubr.msk.f32.vlgmr.msra.gmra.mxu1 %vm179_vm2, %v6497_v18  ;;  %5773 = vmatmul.mubr.msk.f32.vlgmr.msra.gmra.mxu0 %vm179_vm2, %v6497_v18 }
  0xd9   :  { %5776 = vmatpush3.msra.mxu1 %v174_v11  ;;  %5787 = vmatpush3.msra.mxu0 %v178_v12  ;;  %v5158_v11 = vld [vmem:[%s7412_s2 + $0x240] sm:$0xff] }
  0xda   :  { %5777 = vmatprep.subr.mxu1 %v173_v19  ;;  %5783 = vmatprep.mubr.msk.f32.mxu1 %vm179_vm2, %v6495_v17  ;;  %v5160_v12 = vld [vmem:[%s7412_s2 + $0x260] sm:$0xff] }
  0xdb   :  { %5788 = vmatprep.subr.mxu0 %v177_v20  ;;  %5794 = vmatprep.mubr.msk.f32.mxu0 %vm179_vm2, %v6495_v17 }
  0xdc   :  { %5778 = vmatpush3.msra.mxu1 %v173_v19  ;;  %5789 = vmatpush3.msra.mxu0 %v177_v20 }
  0xdd   :  { %5779 = vmatprep.subr.mxu1 %v172_v21  ;;  %5790 = vmatprep.subr.mxu0 %v176_v22 }
  0xde   :  { %5780 = vmatpush3.msra.mxu1 %v172_v21  ;;  %5791 = vmatpush3.msra.mxu0 %v176_v22 }
  0xdf   :  { %5781 = vmatprep.subr.mxu1 %v171_v23  ;;  %5792 = vmatprep.subr.mxu0 %v175_v24 }
  0xe0   :  { %5782 = vmatpush3.msra.mxu1 %v171_v23  ;;  %5793 = vmatpush3.msra.mxu0 %v175_v24  ;;  %v5159_v23 = vld [vmem:[%s7412_s2 + $0x248] sm:$0xff] }
  0xe1   :  { %5784 = vmatmul.mubr.msk.f32.vlgmr.msra.gmra.mxu1 %vm179_vm2, %v6497_v18  ;;  %5795 = vmatmul.mubr.msk.f32.vlgmr.msra.gmra.mxu0 %vm179_vm2, %v6497_v18  ;;  %v5161_v24 = vld [vmem:[%s7412_s2 + $0x268] sm:$0xff] }
  0xe2   :  { %5797 = vmatprep.subr.mxu1 %v5173_v25  ;;  %5808 = vmatprep.subr.mxu0 %v5177_v26 }
  0xe3   :  { %5798 = vmatpush3.msra.mxu1 %v5173_v25  ;;  %5805 = vmatprep.mubr.msk.f32.mxu1 %vm179_vm2, %v6495_v17 }
  0xe4   :  { %5809 = vmatpush3.msra.mxu0 %v5177_v26  ;;  %5816 = vmatprep.mubr.msk.f32.mxu0 %vm179_vm2, %v6495_v17 }
  0xe5   :  { %5799 = vmatprep.subr.mxu1 %v5172_v27  ;;  %5810 = vmatprep.subr.mxu0 %v5176_v28 }
  0xe6   :  { %5800 = vmatpush3.msra.mxu1 %v5172_v27  ;;  %5811 = vmatpush3.msra.mxu0 %v5176_v28 }
  0xe7   :  { %5801 = vmatprep.subr.mxu1 %v5171_v29  ;;  %5812 = vmatprep.subr.mxu0 %v5175_v30 }
  0xe8   :  { %5802 = vmatpush3.msra.mxu1 %v5171_v29  ;;  %5813 = vmatpush3.msra.mxu0 %v5175_v30 }
  0xe9   :  { %5803 = vmatprep.subr.mxu1 %v5170_v31  ;;  %5814 = vmatprep.subr.mxu0 %v5174_v32 }
  0xea   :  { %5804 = vmatpush3.msra.mxu1 %v5170_v31  ;;  %5815 = vmatpush3.msra.mxu0 %v5174_v32 }
  0xeb   :  { %5806 = vmatmul.mubr.msk.f32.vlgmr.msra.gmra.mxu1 %vm179_vm2, %v6497_v18  ;;  %5817 = vmatmul.mubr.msk.f32.vlgmr.msra.gmra.mxu0 %vm179_vm2, %v6497_v18 }
  0xec   :  { %5819 = vmatprep.subr.mxu1 %v5181_v33  ;;  %5830 = vmatprep.subr.mxu0 %v5185_v34 }
  0xed   :  { %5820 = vmatpush3.msra.mxu1 %v5181_v33  ;;  %5827 = vmatprep.mubr.msk.f32.mxu1 %vm179_vm2, %v6495_v17  ;;  %v122_v33 = vlaneseq }
  0xee   :  { %5831 = vmatpush3.msra.mxu0 %v5185_v34  ;;  %5838 = vmatprep.mubr.msk.f32.mxu0 %vm179_vm2, %v6495_v17 }
  0xef   :  { %5821 = vmatprep.subr.mxu1 %v5180_v35  ;;  %5832 = vmatprep.subr.mxu0 %v5184_v36  ;;  %v123_v34 = vand.u32 127, %v122_v33 }
  0xf0   :  { %5822 = vmatpush3.msra.mxu1 %v5180_v35  ;;  %5833 = vmatpush3.msra.mxu0 %v5184_v36  ;;  %v140_v35 = vstv %s139_s29 }
  0xf1   :  { %5823 = vmatprep.subr.mxu1 %v5179_v37  ;;  %5834 = vmatprep.subr.mxu0 %v5183_v38  ;;  %vm137_vm4 = vcmp.lt.s32.totalorder %v123_v34, 8  ;;  %vm142_vm5 = vcmp.ge.s32.totalorder %v123_v34, 8  ;;  %vm143_vm6 = vcmp.lt.s32.totalorder %v123_v34, 16 }
  0xf2   :  { %5824 = vmatpush3.msra.mxu1 %v5179_v37  ;;  %5835 = vmatpush3.msra.mxu0 %v5183_v38  ;;  %v141_v36 = vsel %vm137_vm4, %v140_v35, 0  ;;  %vm144_vm7 = vmand %vm142_vm5, %vm143_vm6  ;;  %v146_v37 = vstv %s5153_s30  ;;  %v128_v38 = vand.u32 7, %v123_v34 }
  0xf3   :  { %5825 = vmatprep.subr.mxu1 %v5178_v39  ;;  %5836 = vmatprep.subr.mxu0 %v5182_v40 }
  0xf4   :  { %5826 = vmatpush3.msra.mxu1 %v5178_v39  ;;  %5837 = vmatpush3.msra.mxu0 %v5182_v40  ;;  %v147_v39 = vsel %vm144_vm7, %v146_v37, %v141_v36  ;;  %v150_v40 = vld [vmem:[%s7413_s3 + $0x30] sm:$0xff] }
  0xf5   :  { %5828 = vmatmul.mubr.msk.f32.vlgmr.msra.gmra.mxu1 %vm179_vm2, %v6497_v18  ;;  %5839 = vmatmul.mubr.msk.f32.vlgmr.msra.gmra.mxu0 %vm179_vm2, %v6497_v18  ;;  %vm148_vm8 = vcmp.lt.s32.totalorder %v128_v38, %v147_v39 }
  0xf6   :  { %5841 = vmatprep.subr.mxu1 %v5197_v41  ;;  %5852 = vmatprep.subr.mxu0 %v5201_v42 }
  0xf7   :  { %5842 = vmatpush3.msra.mxu1 %v5197_v41  ;;  %5849 = vmatprep.mubr.msk.f32.mxu1 %vm179_vm2, %v6495_v17 }
  0xf8   :  { %5853 = vmatpush3.msra.mxu0 %v5201_v42  ;;  %5860 = vmatprep.mubr.msk.f32.mxu0 %vm179_vm2, %v6495_v17 }
  0xf9   :  { %5843 = vmatprep.subr.mxu1 %v5196_v43  ;;  %5854 = vmatprep.subr.mxu0 %v5200_v44 }
  0xfa   :  { %5844 = vmatpush3.msra.mxu1 %v5196_v43  ;;  %5855 = vmatpush3.msra.mxu0 %v5200_v44  ;;  %v6417_v43 = vmov -1e+09  }
  0xfb   :  { %5845 = vmatprep.subr.mxu1 %v5195_v45  ;;  %5856 = vmatprep.subr.mxu0 %v5199_v46  ;;  %v149_v44 = vsel %vm148_vm8, 0.0, %v6417_v43 }
  0xfc   :  { %5846 = vmatpush3.msra.mxu1 %v5195_v45  ;;  %5857 = vmatpush3.msra.mxu0 %v5199_v46  ;;  %v151_v45 = vld [vmem:[%s7413_s3 + $0x38] sm:$0xff]  ;;  %v6725_v46 = vadd.f32 %v150_v40, %v149_v44 }
  0xfd   :  { %5847 = vmatprep.subr.mxu1 %v5194_v47  ;;  %5858 = vmatprep.subr.mxu0 %v5198_v48 }
  0xfe   :  { %5848 = vmatpush3.msra.mxu1 %v5194_v47  ;;  %5859 = vmatpush3.msra.mxu0 %v5198_v48 }
  0xff   :  { %5850 = vmatmul.mubr.msk.f32.vlgmr.msra.gmra.mxu1 %vm179_vm2, %v6497_v18  ;;  %5861 = vmatmul.mubr.msk.f32.vlgmr.msra.gmra.mxu0 %vm179_vm2, %v6497_v18 }
 0x100   :  { %5863 = vmatprep.subr.mxu1 %v5205_v49  ;;  %5874 = vmatprep.subr.mxu0 %v5209_v50 }
 0x101   :  { %5864 = vmatpush3.msra.mxu1 %v5205_v49  ;;  %5871 = vmatprep.mubr.msk.f32.mxu1 %vm179_vm2, %v6495_v17  ;;  %v6727_v49 = vadd.f32 %v151_v45, %v149_v44 }
 0x102   :  { %5875 = vmatpush3.msra.mxu0 %v5209_v50  ;;  %5882 = vmatprep.mubr.msk.f32.mxu0 %vm179_vm2, %v6495_v17 }
 0x103   :  { %5865 = vmatprep.subr.mxu1 %v5204_v51  ;;  %5876 = vmatprep.subr.mxu0 %v5208_v52 }
 0x104   :  { %5866 = vmatpush3.msra.mxu1 %v5204_v51  ;;  %5877 = vmatpush3.msra.mxu0 %v5208_v52 }
 0x105   :  { %5867 = vmatprep.subr.mxu1 %v5203_v53  ;;  %5878 = vmatprep.subr.mxu0 %v5207_v54 }
 0x106   :  { %5868 = vmatpush3.msra.mxu1 %v5203_v53  ;;  %5879 = vmatpush3.msra.mxu0 %v5207_v54 }
 0x107   :  { %5869 = vmatprep.subr.mxu1 %v5202_v55  ;;  %5880 = vmatprep.subr.mxu0 %v5206_v56 }
 0x108   :  { %5870 = vmatpush3.msra.mxu1 %v5202_v55  ;;  %5881 = vmatpush3.msra.mxu0 %v5206_v56 }
 0x109   :  { %5872 = vmatmul.mubr.msk.f32.vlgmr.msra.gmra.mxu1 %vm179_vm2, %v6497_v18  ;;  %5883 = vmatmul.mubr.msk.f32.vlgmr.msra.gmra.mxu0 %vm179_vm2, %v6497_v18 }
 0x198   :  { %v5763_v57 = vpop.f32.mrf.mxu1  ;;  %v5774_v58 = vpop.f32.mrf.mxu0 }
 0x199   :  { %v258_v13 = vadd.f32 %v5763_v57, %v5155_v9  ;;  %v333_v14 = vadd.f32 %v5774_v58, %v5157_v10 }
 0x19a   :  { %v252_v61 = vpop.f32.mrf.mxu1  ;;  %v327_v62 = vpop.f32.mrf.mxu0 }
 0x19b   :  { %v253_v63 = vadd.f32 %v5154_v59, %v252_v61  ;;  %v328_v0 = vadd.f32 %v5156_v60, %v327_v62 }
 0x19d   :  { %5889 = vmatprep.mubr.msk.f32.mxu1 %vm1120_vm3, %v253_v63  ;;  %5896 = vmatprep.mubr.msk.f32.mxu0 %vm1120_vm3, %v328_v0 }
 0x1a1   :  { %v5785_v1 = vpop.f32.mrf.mxu1  ;;  %v5796_v2 = vpop.f32.mrf.mxu0 }
 0x1a2   :  { %v408_v25 = vadd.f32 %v5785_v1, %v5159_v23  ;;  %v483_v26 = vadd.f32 %v5796_v2, %v5161_v24 }
 0x1a3   :  { %v402_v3 = vpop.f32.mrf.mxu1  ;;  %v477_v4 = vpop.f32.mrf.mxu0 }
 0x1a4   :  { %v403_v15 = vadd.f32 %v5158_v11, %v402_v3  ;;  %v478_v16 = vadd.f32 %v5160_v12, %v477_v4 }
 0x1ab   :  { %v5807_v5 = vpop.f32.mrf.mxu1  ;;  %v5818_v6 = vpop.f32.mrf.mxu0 }
 0x1ac   :  { %5885 = vmatprep.subr.msk.mxu1 %vm1120_vm3, %v5807_v5  ;;  %5892 = vmatprep.subr.msk.mxu0 %vm1120_vm3, %v5818_v6 }
 0x1ad   :  { %v569_v7 = vpop.f32.mrf.mxu1  ;;  %v644_v8 = vpop.f32.mrf.mxu0  ;;  %5886 = vmatpush3.xpose.msk.msra.mxu1 %vm1120_vm3, %v5807_v5  ;;  %5893 = vmatpush3.xpose.msk.msra.mxu0 %vm1120_vm3, %v5818_v6 }
 0x1ae   :  { %5887 = vmatprep.subr.msk.mxu1 %vm1120_vm3, %v569_v7  ;;  %5894 = vmatprep.subr.msk.mxu0 %vm1120_vm3, %v644_v8 }
 0x1b1   :  { %5888 = vmatpush3.xpose.msk.msra.mxu1 %vm1120_vm3, %v569_v7  ;;  %5895 = vmatpush3.xpose.msk.msra.mxu0 %vm1120_vm3, %v644_v8 }
 0x1b4   :  { %5890 = vmatmul.mubr.msk.f32.vlgmr.msra.gmra.mxu1 %vm1120_vm3, %v258_v13  ;;  %5897 = vmatmul.mubr.msk.f32.vlgmr.msra.gmra.mxu0 %vm1120_vm3, %v333_v14 }
 0x1b5   :  { %v5829_v19 = vpop.f32.mrf.mxu1  ;;  %v5840_v20 = vpop.f32.mrf.mxu0  ;;  %5903 = vmatprep.mubr.msk.f32.mxu1 %vm1120_vm3, %v403_v15  ;;  %5910 = vmatprep.mubr.msk.f32.mxu0 %vm1120_vm3, %v478_v16 }
 0x1b6   :  { %5899 = vmatprep.subr.msk.mxu1 %vm1120_vm3, %v5829_v19  ;;  %5906 = vmatprep.subr.msk.mxu0 %vm1120_vm3, %v5840_v20 }
 0x1b7   :  { %v719_v21 = vpop.f32.mrf.mxu1  ;;  %v794_v22 = vpop.f32.mrf.mxu0  ;;  %5900 = vmatpush3.xpose.msk.msra.mxu1 %vm1120_vm3, %v5829_v19  ;;  %5907 = vmatpush3.xpose.msk.msra.mxu0 %vm1120_vm3, %v5840_v20 }
 0x1b8   :  { %5901 = vmatprep.subr.msk.mxu1 %vm1120_vm3, %v719_v21  ;;  %5908 = vmatprep.subr.msk.mxu0 %vm1120_vm3, %v794_v22 }
 0x1bb   :  { %5902 = vmatpush3.xpose.msk.msra.mxu1 %vm1120_vm3, %v719_v21  ;;  %5909 = vmatpush3.xpose.msk.msra.mxu0 %vm1120_vm3, %v794_v22 }
 0x1be   :  { %5904 = vmatmul.mubr.msk.f32.vlgmr.msra.gmra.mxu1 %vm1120_vm3, %v408_v25  ;;  %5911 = vmatmul.mubr.msk.f32.vlgmr.msra.gmra.mxu0 %vm1120_vm3, %v483_v26 }
 0x1bf   :  { %v5851_v27 = vpop.f32.mrf.mxu1  ;;  %v5862_v28 = vpop.f32.mrf.mxu0 }
 0x1c0   :  { %5913 = vmatprep.subr.mxu1 %v5851_v27  ;;  %5920 = vmatprep.subr.mxu0 %v5862_v28 }
 0x1c1   :  { %v886_v29 = vpop.f32.mrf.mxu1  ;;  %v961_v30 = vpop.f32.mrf.mxu0  ;;  %5914 = vmatpush3.msra.mxu1 %v5851_v27  ;;  %5921 = vmatpush3.msra.mxu0 %v5862_v28 }
 0x1c2   :  { %5915 = vmatprep.subr.mxu1 %v886_v29  ;;  %5922 = vmatprep.subr.mxu0 %v961_v30 }
 0x1c3   :  { %5916 = vmatpush3.msra.mxu1 %v886_v29  ;;  %5923 = vmatpush3.msra.mxu0 %v961_v30 }
 0x1c9   :  { %v6709_v31 = vpop.f32.mrf.mxu1  ;;  %v6711_v32 = vpop.f32.mrf.mxu0 }
 0x1ca   :  { %5927 = vmatprep.subr.mxu1 %v6709_v31  ;;  %5934 = vmatprep.subr.mxu0 %v6711_v32 }
 0x1cb   :  { %v6718_v41 = vpop.f32.mrf.mxu1  ;;  %v6720_v42 = vpop.f32.mrf.mxu0 }
 0x274   :  { %v5891_v47 = vpop.f32.mrf.mxu1  ;;  %v5898_v48 = vpop.f32.mrf.mxu0 }
 0x275   :  { %v1205_v54 = vadd.f32 %v5891_v47, %v6727_v49  ;;  %v1292_v55 = vadd.f32 %v5898_v48, %v6727_v49 }
 0x276   :  { %v1199_v50 = vpop.f32.mrf.mxu1  ;;  %v1286_v51 = vpop.f32.mrf.mxu0 }
 0x277   :  { %v1200_v52 = vadd.f32 %v1199_v50, %v6725_v46  ;;  %v1287_v53 = vadd.f32 %v1286_v51, %v6725_v46  ;;  %v1479_v58 = vsel %vm1469_vm9, %v1292_v55, -inf  ;;  %v1473_v59 = vsel %vm1469_vm9, %v1205_v54, -inf }
 0x279   :  { %v1476_v56 = vsel %vm1469_vm9, %v1287_v53, -inf  ;;  %v1470_v57 = vsel %vm1469_vm9, %v1200_v52, -inf }
 0x27a   :  { %1477 = vmax.xlane.f32.xlu1 %v1476_v56  ;;  %1471 = vmax.xlane.f32.xlu0 %v1470_v57 }
 0x27e   :  { %v5905_v60 = vpop.f32.mrf.mxu1  ;;  %v5912_v61 = vpop.f32.mrf.mxu0  ;;  %1480 = vmax.xlane.f32.xlu1 %v1479_v58  ;;  %1474 = vmax.xlane.f32.xlu0 %v1473_v59 }
 0x27f   :  { %v1379_v62 = vadd.f32 %v5905_v60, %v6727_v49  ;;  %v1466_v1 = vadd.f32 %v5912_v61, %v6727_v49 }
 0x280   :  { %v1460_v63 = vpop.f32.mrf.mxu0  ;;  %v1373_v0 = vpop.f32.mrf.mxu1 }
 0x281   :  { %v1374_v2 = vadd.f32 %v1373_v0, %v6725_v46  ;;  %v1485_v3 = vsel %vm1469_vm9, %v1379_v62, -inf  ;;  %v1461_v4 = vadd.f32 %v1460_v63, %v6725_v46  ;;  %v1491_v6 = vsel %vm1469_vm9, %v1466_v1, -inf }
 0x282   :  { %1486 = vmax.xlane.f32.xlu1 %v1485_v3 }
 0x283   :  { %v1482_v5 = vsel %vm1469_vm9, %v1374_v2, -inf  ;;  %v1488_v7 = vsel %vm1469_vm9, %v1461_v4, -inf }
 0x284   :  { %1483 = vmax.xlane.f32.xlu0 %v1482_v5 }
 0x286   :  { %1492 = vmax.xlane.f32.xlu1 %v1491_v6 }
 0x288   :  { %1489 = vmax.xlane.f32.xlu0 %v1488_v7  ;;  %v5245_v7 = vld [vmem:[%s7412_s2 + $0x198] sm:$0xff] }
 0x303   :  { %v1478_v8 = vpop.xlane.xlu1 %1477  ;;  %v1472_v9 = vpop.xlane.xlu0 %1471 }
 0x304   :  { %v1496_v10 = vsub.f32 %v1287_v53, %v1478_v8  ;;  %v1494_v11 = vsub.f32 %v1200_v52, %v1472_v9 }
 0x306   :  { %v1502_v12 = vmul.f32 1.442695, %v1494_v11  ;;  %v1506_v13 = vmul.f32 1.442695, %v1496_v10 }
 0x307   :  { %v1481_v14 = vpop.xlane.xlu1 %1480  ;;  %v1475_v15 = vpop.xlane.xlu0 %1474 }
 0x308   :  { %v1497_v16 = vsub.f32 %v1292_v55, %v1481_v14  ;;  %v1495_v19 = vsub.f32 %v1205_v54, %v1475_v15  ;;  %6296 = vpow2.f32 %v1502_v12  ;;  %v5244_v14 = vld [vmem:[%s7412_s2 + $0x190] sm:$0xff] }
 0x309   :  { %6298 = vpow2.f32 %v1506_v13 }
 0x30a   :  { %v1504_v20 = vmul.f32 1.442695, %v1495_v19  ;;  %v1508_v21 = vmul.f32 1.442695, %v1497_v16  ;;  %v5248_v16 = vld [vmem:[%s7412_s2 + $0x1b0] sm:$0xff]  ;;  %v5242_v19 = vld [vmem:[%s7412_s2 + $0x180] sm:$0xff] }
 0x30b   :  { %v1487_v22 = vpop.xlane.xlu1 %1486 }
 0x30c   :  { %v1499_v23 = vsub.f32 %v1379_v62, %v1487_v22  ;;  %6300 = vpow2.f32 %v1504_v20  ;;  %v5247_v20 = vld [vmem:[%s7412_s2 + $0x1a8] sm:$0xff]  ;;  %v5253_v22 = vld [vmem:[%s7412_s2 + $0x1d8] sm:$0xff] }
 0x30d   :  { %v1484_v24 = vpop.xlane.xlu0 %1483  ;;  %6302 = vpow2.f32 %v1508_v21  ;;  %v5246_v21 = vld [vmem:[%s7412_s2 + $0x1a0] sm:$0xff] }
 0x30e   :  { %v1498_v25 = vsub.f32 %v1374_v2, %v1484_v24  ;;  %v1512_v26 = vmul.f32 1.442695, %v1499_v23  ;;  %v5257_v23 = vld [vmem:[%s7412_s2 + $0x1f8] sm:$0xff] }
 0x30f   :  { %v1493_v27 = vpop.xlane.xlu1 %1492 }
 0x310   :  { %v1510_v28 = vmul.f32 1.442695, %v1498_v25  ;;  %v1501_v29 = vsub.f32 %v1466_v1, %v1493_v27 }
 0x311   :  { %v1490_v30 = vpop.xlane.xlu0 %1489 }
 0x312   :  { %6304 = vpow2.f32 %v1510_v28  ;;  %v1500_v33 = vsub.f32 %v1461_v4, %v1490_v30  ;;  %v1516_v34 = vmul.f32 1.442695, %v1501_v29  ;;  %v5251_v29 = vld [vmem:[%s7412_s2 + $0x1c8] sm:$0xff]  ;;  %v5256_v30 = vld [vmem:[%s7412_s2 + $0x1f0] sm:$0xff] }
 0x313   :  { %6306 = vpow2.f32 %v1512_v26  ;;  %v5252_v26 = vld [vmem:[%s7412_s2 + $0x1d0] sm:$0xff] }
 0x314   :  { %v1514_v35 = vmul.f32 1.442695, %v1500_v33 }
 0x315   :  { %v6297_v36 = vpop.eup %6296 }
 0x316   :  { %6308 = vpow2.f32 %v1514_v35  ;;  %v1518_v37 = vsel %vm1469_vm9, %v6297_v36, 0.0  ;;  %v6299_v38 = vpop.eup %6298  ;;  %v5250_v35 = vld [vmem:[%s7412_s2 + $0x1c0] sm:$0xff] }
 0x317   :  { %6310 = vpow2.f32 %v1516_v34  ;;  %1519 = vadd.xlane.f32.xlu0 %v1518_v37  ;;  %v1524_v40 = vsel %vm1469_vm9, %v6299_v38, 0.0 }
 0x319   :  { %v6301_v39 = vpop.eup %6300 }
 0x31a   :  { %v1521_v43 = vsel %vm1469_vm9, %v6301_v39, 0.0  ;;  %v6303_v44 = vpop.eup %6302 }
 0x31b   :  { %1525 = vadd.xlane.f32.xlu0 %v1524_v40  ;;  %1522 = vadd.xlane.f32.xlu1 %v1521_v43  ;;  %v1527_v47 = vsel %vm1469_vm9, %v6303_v44, 0.0 }
 0x31f   :  { %v6305_v45 = vpop.eup %6304  ;;  %1528 = vadd.xlane.f32.xlu1 %v1527_v47 }
 0x320   :  { %v6307_v48 = vpop.eup %6306  ;;  %v1530_v50 = vsel %vm1469_vm9, %v6305_v45, 0.0 }
 0x321   :  { %1531 = vadd.xlane.f32.xlu0 %v1530_v50  ;;  %v1533_v52 = vsel %vm1469_vm9, %v6307_v48, 0.0 }
 0x323   :  { %v6309_v51 = vpop.eup %6308  ;;  %1534 = vadd.xlane.f32.xlu1 %v1533_v52 }
 0x324   :  { %v6311_v53 = vpop.eup %6310  ;;  %v1536_v54 = vsel %vm1469_vm9, %v6309_v51, 0.0 }
 0x325   :  { %1537 = vadd.xlane.f32.xlu0 %v1536_v54  ;;  %v1539_v55 = vsel %vm1469_vm9, %v6311_v53, 0.0 }
 0x327   :  { %1540 = vadd.xlane.f32.xlu1 %v1539_v55 }
 0x3a0   :  { %v1520_v56 = vpop.xlane.xlu0 %1519 }
 0x3a1   :  { %6312 = vrcp.f32 %v1520_v56 }
 0x3a4   :  { %v1523_v57 = vpop.xlane.xlu1 %1522  ;;  %v1526_v58 = vpop.xlane.xlu0 %1525 }
 0x3a5   :  { %6314 = vrcp.f32 %v1523_v57 }
 0x3a6   :  { %6316 = vrcp.f32 %v1526_v58 }
 0x3a8   :  { %v1529_v59 = vpop.xlane.xlu1 %1528 }
 0x3a9   :  { %6318 = vrcp.f32 %v1529_v59 }
 0x3aa   :  { %v1532_v60 = vpop.xlane.xlu0 %1531 }
 0x3ab   :  { %6320 = vrcp.f32 %v1532_v60 }
 0x3ac   :  { %v1535_v61 = vpop.xlane.xlu1 %1534 }
 0x3ad   :  { %6322 = vrcp.f32 %v1535_v61  ;;  %v5282_v61 = vld [vmem:[%s7413_s3 + $0x40] ss:$0 sm:$0xff] }
 0x3ae   :  { %v1538_v62 = vpop.xlane.xlu0 %1537  ;;  %v6313_v63 = vpop.eup %6312 }
 0x3af   :  { %6324 = vrcp.f32 %v1538_v62  ;;  %v1550_v0 = vmul.f32 %v6313_v63, %v6297_v36  ;;  %v5255_v36 = vld [vmem:[%s7412_s2 + $0x1e8] sm:$0xff] }
 0x3b0   :  { %v1541_v1 = vpop.xlane.xlu1 %1540 }
 0x3b1   :  { %6326 = vrcp.f32 %v1541_v1  ;;  %5917 = vmatprep.mubr.msk.f32.mxu1 %vm1469_vm9, %v1550_v0 }
 0x3b2   :  { %v6315_v2 = vpop.eup %6314 }
 0x3b3   :  { %v6317_v3 = vpop.eup %6316  ;;  %v1551_v4 = vmul.f32 %v6315_v2, %v6301_v39  ;;  %v5254_v39 = vld [vmem:[%s7412_s2 + $0x1e0] sm:$0xff] }
 0x3b4   :  { %v1552_v5 = vmul.f32 %v6317_v3, %v6299_v38 }
 0x3b5   :  { %5918 = vmatmul.mubr.msk.f32.vlgmr.msra.gmra.mxu1 %vm1469_vm9, %v1551_v4 }
 0x3b6   :  { %v6319_v6 = vpop.eup %6318  ;;  %5924 = vmatprep.mubr.msk.f32.mxu0 %vm1469_vm9, %v1552_v5  ;;  %5928 = vmatpush3.msra.mxu1 %v6709_v31  ;;  %v5249_v31 = vld [vmem:[%s7412_s2 + $0x1b8] sm:$0xff] }
 0x3b7   :  { %5929 = vmatprep.subr.mxu1 %v6718_v41  ;;  %v1553_v9 = vmul.f32 %v6319_v6, %v6303_v44 }
 0x3b8   :  { %v6321_v8 = vpop.eup %6320  ;;  %5930 = vmatpush3.msra.mxu1 %v6718_v41 }
 0x3b9   :  { %v1554_v10 = vmul.f32 %v6321_v8, %v6305_v45  ;;  %5925 = vmatmul.mubr.msk.f32.vlgmr.msra.gmra.mxu0 %vm1469_vm9, %v1553_v9  ;;  %5941 = vmatprep.subr.msk.mxu1 %vm1120_vm3, %v5245_v7 }
 0x3ba   :  { %v6323_v11 = vpop.eup %6322  ;;  %5935 = vmatpush3.msra.mxu0 %v6711_v32 }
 0x3bb   :  { %5931 = vmatprep.mubr.msk.f32.mxu1 %vm1469_vm9, %v1554_v10  ;;  %5936 = vmatprep.subr.mxu0 %v6720_v42  ;;  %v1555_v13 = vmul.f32 %v6323_v11, %v6307_v48 }
 0x3bc   :  { %v6325_v12 = vpop.eup %6324  ;;  %5937 = vmatpush3.msra.mxu0 %v6720_v42  ;;  %v5243_v42 = vld [vmem:[%s7412_s2 + $0x188] sm:$0xff] }
 0x3bd   :  { %v1556_v41 = vmul.f32 %v6325_v12, %v6309_v51  ;;  %5932 = vmatmul.mubr.msk.f32.vlgmr.msra.gmra.mxu1 %vm1469_vm9, %v1555_v13  ;;  %5952 = vmatprep.subr.msk.mxu0 %vm1120_vm3, %v5249_v31 }
 0x3be   :  { %v6327_v32 = vpop.eup %6326  ;;  %5942 = vmatpush3.xpose.msk.msra.mxu1 %vm1120_vm3, %v5245_v7 }
 0x3bf   :  { %5938 = vmatprep.mubr.msk.f32.mxu0 %vm1469_vm9, %v1556_v41  ;;  %v1557_v15 = vmul.f32 %v6327_v32, %v6311_v53  ;;  %5943 = vmatprep.subr.msk.mxu1 %vm1120_vm3, %v5244_v14 }
 0x3c1   :  { %5939 = vmatmul.mubr.msk.f32.vlgmr.msra.gmra.mxu0 %vm1469_vm9, %v1557_v15  ;;  %v2337_v15 = vld [vmem:[%s7413_s3 + $0x88] sm:$0xff] }
 0x3c2   :  { %5944 = vmatpush3.xpose.msk.msra.mxu1 %vm1120_vm3, %v5244_v14  ;;  %5953 = vmatpush3.xpose.msk.msra.mxu0 %vm1120_vm3, %v5249_v31 }
 0x3c3   :  { %5945 = vmatprep.subr.msk.mxu1 %vm1120_vm3, %v5243_v42  ;;  %5954 = vmatprep.subr.msk.mxu0 %vm1120_vm3, %v5248_v16 }
 0x3c6   :  { %5946 = vmatpush3.xpose.msk.msra.mxu1 %vm1120_vm3, %v5243_v42  ;;  %5955 = vmatpush3.xpose.msk.msra.mxu0 %vm1120_vm3, %v5248_v16  ;;  %v2336_v42 = vld [vmem:[%s7413_s3 + $0x80] sm:$0xff]  ;;  %v2335_v16 = vld [vmem:[%s7413_s3 + $0x78] sm:$0xff] }
 0x3c7   :  { %5947 = vmatprep.subr.msk.mxu1 %vm1120_vm3, %v5242_v19  ;;  %5956 = vmatprep.subr.msk.mxu0 %vm1120_vm3, %v5247_v20 }
 0x3ca   :  { %5948 = vmatpush3.xpose.msk.msra.mxu1 %vm1120_vm3, %v5242_v19  ;;  %5957 = vmatpush3.xpose.msk.msra.mxu0 %vm1120_vm3, %v5247_v20  ;;  %v2434_v19 = vld [vmem:[%s7413_s3 + $0xd0] sm:$0xff]  ;;  %v2433_v20 = vld [vmem:[%s7413_s3 + $0xc8] sm:$0xff] }
 0x3cb   :  { %5958 = vmatprep.subr.msk.mxu0 %vm1120_vm3, %v5246_v21  ;;  %5963 = vmatprep.subr.msk.mxu1 %vm1120_vm3, %v5253_v22 }
 0x3ce   :  { %5959 = vmatpush3.xpose.msk.msra.mxu0 %vm1120_vm3, %v5246_v21  ;;  %v2432_v21 = vld [vmem:[%s7413_s3 + $0xc0] sm:$0xff] }
 0x3cf   :  { %5974 = vmatprep.subr.msk.mxu0 %vm1120_vm3, %v5257_v23 }
 0x475   :  { %v5919_v24 = vpop.f32.mrf.mxu1 }
 0x477   :  { %v1630_v25 = vpop.f32.mrf.mxu1 }
 0x478   :  { %5949 = vmatprep.mubr.msk.f32.mxu1 %vm1120_vm3, %v1630_v25 }
 0x479   :  { %v5926_v27 = vpop.f32.mrf.mxu0  ;;  %5950 = vmatmul.mubr.msk.f32.vlgmr.msra.gmra.mxu1 %vm1120_vm3, %v5919_v24 }
 0x47a   :  { %5964 = vmatpush3.xpose.msk.msra.mxu1 %vm1120_vm3, %v5253_v22  ;;  %v2431_v22 = vld [vmem:[%s7413_s3 + $0xb8] sm:$0xff] }
 0x47b   :  { %v1711_v28 = vpop.f32.mrf.mxu0  ;;  %5965 = vmatprep.subr.msk.mxu1 %vm1120_vm3, %v5252_v26 }
 0x47c   :  { %5960 = vmatprep.mubr.msk.f32.mxu0 %vm1120_vm3, %v1711_v28 }
 0x47d   :  { %v5933_v33 = vpop.f32.mrf.mxu1  ;;  %5961 = vmatmul.mubr.msk.f32.vlgmr.msra.gmra.mxu0 %vm1120_vm3, %v5926_v27 }
 0x47e   :  { %5966 = vmatpush3.xpose.msk.msra.mxu1 %vm1120_vm3, %v5252_v26  ;;  %5975 = vmatpush3.xpose.msk.msra.mxu0 %vm1120_vm3, %v5257_v23 }
 0x47f   :  { %v1792_v34 = vpop.f32.mrf.mxu1  ;;  %5967 = vmatprep.subr.msk.mxu1 %vm1120_vm3, %v5251_v29  ;;  %5976 = vmatprep.subr.msk.mxu0 %vm1120_vm3, %v5256_v30 }
 0x480   :  { %5971 = vmatprep.mubr.msk.f32.mxu1 %vm1120_vm3, %v1792_v34 }
 0x481   :  { %v5940_v37 = vpop.f32.mrf.mxu0 }
 0x482   :  { %5968 = vmatpush3.xpose.msk.msra.mxu1 %vm1120_vm3, %v5251_v29  ;;  %5977 = vmatpush3.xpose.msk.msra.mxu0 %vm1120_vm3, %v5256_v30  ;;  %v5283_v30 = vld [vmem:[%s7413_s3 + $0x48] ss:$0 sm:$0xff] }
 0x483   :  { %v1873_v38 = vpop.f32.mrf.mxu0  ;;  %5969 = vmatprep.subr.msk.mxu1 %vm1120_vm3, %v5250_v35  ;;  %5978 = vmatprep.subr.msk.mxu0 %vm1120_vm3, %v5255_v36 }
 0x484   :  { %5982 = vmatprep.mubr.msk.f32.mxu0 %vm1120_vm3, %v1873_v38 }
 0x486   :  { %5970 = vmatpush3.xpose.msk.msra.mxu1 %vm1120_vm3, %v5250_v35  ;;  %5979 = vmatpush3.xpose.msk.msra.mxu0 %vm1120_vm3, %v5255_v36 }
 0x487   :  { %5980 = vmatprep.subr.msk.mxu0 %vm1120_vm3, %v5254_v39 }
 0x489   :  { %5972 = vmatmul.mubr.msk.f32.vlgmr.msra.gmra.mxu1 %vm1120_vm3, %v5933_v33 }
 0x48a   :  { %5981 = vmatpush3.xpose.msk.msra.mxu0 %vm1120_vm3, %v5254_v39 }
 0x48b   :  { %5996 = vmatprep.subr.mxu0 %v2434_v19 }
 0x48d   :  { %5983 = vmatmul.mubr.msk.f32.vlgmr.msra.gmra.mxu0 %vm1120_vm3, %v5940_v37  ;;  %v5284_v37 = vld [vmem:[%s7413_s3 + $0x50] ss:$0 sm:$0xff] }
 0x48e   :  { %5997 = vmatpush3.msra.mxu0 %v2434_v19 }
 0x48f   :  { %5998 = vmatprep.subr.mxu0 %v2433_v20 }
 0x490   :  { %5999 = vmatpush3.msra.mxu0 %v2433_v20 }
 0x491   :  { %6000 = vmatprep.subr.mxu0 %v2432_v21 }
 0x492   :  { %6001 = vmatpush3.msra.mxu0 %v2432_v21 }
 0x493   :  { %6002 = vmatprep.subr.mxu0 %v2431_v22 }
 0x494   :  { %6003 = vmatpush3.msra.mxu0 %v2431_v22 }
 0x539   :  { %v5951_v40 = vpop.f32.mrf.mxu1 }
 0x53a   :  { %v2278_v50 = vsel %vm179_vm2, %v5951_v40, 0.0 }
 0x53b   :  { %v1983_v44 = vpop.f32.mrf.mxu1 }
 0x53c   :  { %v2271_v55 = vsel %vm179_vm2, %v1983_v44, 0.0  ;;  %v2429_v44 = vld [vmem:[%s7413_s3 + $0xa8] sm:$0xff] }
 0x53d   :  { %v5962_v43 = vpop.f32.mrf.mxu0 }
 0x53e   :  { %v2279_v47 = vsel %vm179_vm2, %v5962_v43, 0.0  ;;  %v2430_v43 = vld [vmem:[%s7413_s3 + $0xb0] sm:$0xff] }
 0x53f   :  { %v2076_v45 = vpop.f32.mrf.mxu0  ;;  %v2280_v53 = vadd.f32 %v2279_v47, %v2278_v50  ;;  %6004 = vmatprep.subr.mxu0 %v2430_v43  ;;  %v2427_v47 = vld [vmem:[%s7413_s3 + $0x98] sm:$0xff] }
 0x540   :  { %v2272_v51 = vsel %vm179_vm2, %v2076_v45, 0.0  ;;  %6005 = vmatpush3.msra.mxu0 %v2430_v43  ;;  %v2428_v45 = vld [vmem:[%s7413_s3 + $0xa0] sm:$0xff]  ;;  %v5316_v43 = vld [vmem:[%s7412_s2 + $0x2f8] sm:$0xff] }
 0x541   :  { %v2273_v57 = vadd.f32 %v2272_v51, %v2271_v55  ;;  %6006 = vmatprep.subr.mxu0 %v2429_v44 }
 0x542   :  { %6007 = vmatpush3.msra.mxu0 %v2429_v44  ;;  %v5336_v44 = vld [vmem:[%s7412_s2 + $0x358] sm:$0xff] }
 0x543   :  { %6008 = vmatprep.subr.mxu0 %v2428_v45 }
 0x544   :  { %6009 = vmatpush3.msra.mxu0 %v2428_v45  ;;  %v5315_v45 = vld [vmem:[%s7412_s2 + $0x2f0] sm:$0xff] }
 0x545   :  { %6010 = vmatprep.subr.mxu0 %v2427_v47 }
 0x546   :  { %6011 = vmatpush3.msra.mxu0 %v2427_v47  ;;  %v5335_v47 = vld [vmem:[%s7412_s2 + $0x350] sm:$0xff] }
 0x549   :  { %v5973_v48 = vpop.f32.mrf.mxu1 }
 0x54a   :  { %v2281_v52 = vsel %vm179_vm2, %v5973_v48, 0.0  ;;  %v5285_v48 = vld [vmem:[%s7413_s3 + $0x68] ss:$0 sm:$0xff] }
 0x54b   :  { %v2169_v54 = vpop.f32.mrf.mxu1  ;;  %v2282_v58 = vadd.f32 %v2281_v52, %v2280_v53 }
 0x54c   :  { %v2274_v56 = vsel %vm179_vm2, %v2169_v54, 0.0 }
 0x54d   :  { %v5984_v59 = vpop.f32.mrf.mxu0  ;;  %v2275_v62 = vadd.f32 %v2274_v56, %v2273_v57  ;;  %v5288_v56 = vld [vmem:[%s7413_s3 + $0x70] ss:$0 sm:$0xff] }
 0x54e   :  { %v2283_v60 = vsel %vm179_vm2, %v5984_v59, 0.0 }
 0x54f   :  { %v2284_v63 = vadd.f32 %v2283_v60, %v2282_v58  ;;  %v2262_v0 = vpop.f32.mrf.mxu0 }
 0x550   :  { %v2276_v1 = vsel %vm179_vm2, %v2262_v0, 0.0 }
 0x551   :  { %v2291_v2 = vadd.f32 %v5282_v61, %v2284_v63  ;;  %v2277_v3 = vadd.f32 %v2276_v1, %v2275_v62 }
 0x553   :  { %v2290_v4 = vadd.f32 %v5282_v61, %v2277_v3  ;;  %v2293_v5 = vadd.f32 %v2291_v2, %v6497_v18 }
 0x555   :  { %v2299_v6 = vsel %vm179_vm2, %v2293_v5, 0.0  ;;  %v2292_v7 = vadd.f32 %v2290_v4, %v6495_v17  ;;  %v2338_v17 = vld [vmem:[%s7413_s3 + $0x90] sm:$0xff] }
 0x556   :  { %2300 = vadd.xlane.f32.xlu1 %v2299_v6  ;;  %5985 = vmatprep.subr.mxu1 %v2338_v17 }
 0x557   :  { %v2296_v8 = vsel %vm179_vm2, %v2292_v7, 0.0  ;;  %5986 = vmatpush3.msra.mxu1 %v2338_v17  ;;  %v5308_v17 = vld [vmem:[%s7412_s2 + $0x2b8] sm:$0xff] }
 0x558   :  { %2297 = vadd.xlane.f32.xlu0 %v2296_v8  ;;  %5987 = vmatprep.subr.mxu1 %v2337_v15 }
 0x559   :  { %5988 = vmatpush3.msra.mxu1 %v2337_v15  ;;  %v5328_v15 = vld [vmem:[%s7412_s2 + $0x318] sm:$0xff] }
 0x55a   :  { %5989 = vmatprep.subr.mxu1 %v2336_v42 }
 0x55b   :  { %5990 = vmatpush3.msra.mxu1 %v2336_v42 }
 0x55c   :  { %5991 = vmatprep.subr.mxu1 %v2335_v16 }
 0x55d   :  { %5992 = vmatpush3.msra.mxu1 %v2335_v16 }
 0x5df   :  { %v2301_v9 = vpop.xlane.xlu1 %2300 }
 0x5e0   :  { %v2304_v10 = vmul.f32 0.03125, %v2301_v9 }
 0x5e1   :  { %v2298_v11 = vpop.xlane.xlu0 %2297 }
 0x5e2   :  { %v2306_v31 = vsub.f32 %v2293_v5, %v2304_v10  ;;  %v2303_v12 = vmul.f32 0.03125, %v2298_v11  ;;  %v5304_v11 = vld [vmem:[%s7412_s2 + $0x298] sm:$0xff] }
 0x5e3   :  { %6015 = vmatprep.subr.mxu1 %v5304_v11 }
 0x5e4   :  { %v2305_v13 = vsub.f32 %v2292_v7, %v2303_v12  ;;  %v2308_v41 = vmul.f32 %v2306_v31, %v2306_v31  ;;  %v5303_v12 = vld [vmem:[%s7412_s2 + $0x290] sm:$0xff] }
 0x5e6   :  { %v2312_v14 = vsel %vm179_vm2, %v2308_v41, 0.0  ;;  %v2307_v32 = vmul.f32 %v2305_v13, %v2305_v13  ;;  %v5302_v41 = vld [vmem:[%s7412_s2 + $0x288] sm:$0xff] }
 0x5e7   :  { %2313 = vadd.xlane.f32.xlu1 %v2312_v14  ;;  %v5310_v14 = vld [vmem:[%s7412_s2 + $0x2c8] sm:$0xff] }
 0x5e8   :  { %v2309_v18 = vsel %vm179_vm2, %v2307_v32, 0.0  ;;  %v5301_v32 = vld [vmem:[%s7412_s2 + $0x280] sm:$0xff] }
 0x5e9   :  { %2310 = vadd.xlane.f32.xlu0 %v2309_v18  ;;  %v5309_v18 = vld [vmem:[%s7412_s2 + $0x2c0] sm:$0xff] }
 0x670   :  { %v2314_v23 = vpop.xlane.xlu1 %2313 }
 0x671   :  { %v2316_v24 = vmul.f32 0.03125, %v2314_v23 }
 0x672   :  { %v2311_v25 = vpop.xlane.xlu0 %2310 }
 0x673   :  { %v2318_v26 = vadd.f32 1e-05, %v2316_v24  ;;  %v2315_v27 = vmul.f32 0.03125, %v2311_v25  ;;  %v5291_v24 = vld [vmem:[%s7413_s3 + $0x58] ss:$0 sm:$0xff] }
 0x675   :  { %6328 = vrsqrt.f32 %v2318_v26  ;;  %v2317_v28 = vadd.f32 1e-05, %v2315_v27 }
 0x677   :  { %6330 = vrsqrt.f32 %v2317_v28 }
 0x682   :  { %v6329_v29 = vpop.eup %6328 }
 0x683   :  { %v2322_v33 = vmul.f32 %v6329_v29, %v2306_v31  ;;  %v5312_v31 = vld [vmem:[%s7412_s2 + $0x2d8] sm:$0xff]  ;;  %v5292_v29 = vld [vmem:[%s7413_s3 + $0x60] ss:$0 sm:$0xff] }
 0x684   :  { %v6331_v34 = vpop.eup %6330  ;;  %6037 = vmatprep.subr.mxu0 %v5312_v31 }
 0x685   :  { %v2321_v35 = vmul.f32 %v6331_v34, %v2305_v13  ;;  %v2328_v36 = vmul.f32 %v5283_v30, %v2322_v33  ;;  %v5311_v13 = vld [vmem:[%s7412_s2 + $0x2d0] sm:$0xff] }
 0x687   :  { %v2327_v38 = vmul.f32 %v5283_v30, %v2321_v35  ;;  %v2334_v40 = vadd.f32 %v5284_v37, %v2328_v36  ;;  %v5307_v35 = vld [vmem:[%s7412_s2 + $0x2b0] sm:$0xff] }
 0x688   :  { %v5327_v36 = vld [vmem:[%s7412_s2 + $0x310] sm:$0xff] }
 0x689   :  { %v2333_v39 = vadd.f32 %v5284_v37, %v2327_v38  ;;  %v5306_v37 = vld [vmem:[%s7412_s2 + $0x2a8] sm:$0xff] }
 0x68a   :  { %v5326_v38 = vld [vmem:[%s7412_s2 + $0x308] sm:$0xff] }
 0x68b   :  { %5993 = vmatprep.mubr.msk.f32.mxu1 %vm179_vm2, %v2333_v39 }
 0x68c   :  { %5994 = vmatmul.mubr.msk.f32.vlgmr.msra.gmra.mxu1 %vm179_vm2, %v2334_v40 }
 0x68d   :  { %6016 = vmatpush3.msra.mxu1 %v5304_v11  ;;  %v5362_v11 = vld [vmem:[%s7412_s2 + $0x3e8] sm:$0xff] }
 0x68e   :  { %6017 = vmatprep.subr.mxu1 %v5303_v12 }
 0x68f   :  { %6018 = vmatpush3.msra.mxu1 %v5303_v12 }
 0x690   :  { %6019 = vmatprep.subr.mxu1 %v5302_v41 }
 0x691   :  { %6020 = vmatpush3.msra.mxu1 %v5302_v41 }
 0x692   :  { %6021 = vmatprep.subr.mxu1 %v5301_v32 }
 0x693   :  { %6022 = vmatpush3.msra.mxu1 %v5301_v32 }
 0x694   :  { %6026 = vmatprep.subr.mxu1 %v5308_v17 }
 0x74c   :  { %v5995_v50 = vpop.f32.mrf.mxu1 }
 0x74d   :  { %v2422_v51 = vadd.f32 %v5995_v50, %v5285_v48  ;;  %v5334_v50 = vld [vmem:[%s7412_s2 + $0x348] sm:$0xff] }
 0x74e   :  { %v2416_v52 = vpop.f32.mrf.mxu1 }
 0x74f   :  { %v2417_v53 = vadd.f32 %v5285_v48, %v2416_v52  ;;  %v2426_v55 = vmax.f32 %v2422_v51, 0.0  ;;  %v5314_v48 = vld [vmem:[%s7412_s2 + $0x2e8] sm:$0xff]  ;;  %v5313_v51 = vld [vmem:[%s7412_s2 + $0x2e0] sm:$0xff] }
 0x750   :  { %v5333_v52 = vld [vmem:[%s7412_s2 + $0x340] sm:$0xff] }
 0x751   :  { %v2425_v54 = vmax.f32 %v2417_v53, 0.0  ;;  %v5332_v53 = vld [vmem:[%s7412_s2 + $0x338] sm:$0xff] }
 0x753   :  { %6012 = vmatprep.mubr.msk.f32.mxu0 %vm2440_vm10, %v2425_v54  ;;  %v5352_v54 = vld [vmem:[%s7412_s2 + $0x398] sm:$0xff] }
 0x754   :  { %6013 = vmatmul.mubr.msk.f32.vlgmr.msra.gmra.mxu0 %vm2440_vm10, %v2426_v55  ;;  %v5331_v55 = vld [vmem:[%s7412_s2 + $0x330] sm:$0xff] }
 0x755   :  { %6038 = vmatpush3.msra.mxu0 %v5312_v31  ;;  %v5361_v31 = vld [vmem:[%s7412_s2 + $0x3e0] sm:$0xff] }
 0x756   :  { %6039 = vmatprep.subr.mxu0 %v5311_v13 }
 0x757   :  { %6040 = vmatpush3.msra.mxu0 %v5311_v13  ;;  %v5293_v13 = vld [vmem:[%s7412_s2 + $0x480] sm:$0xff] }
 0x758   :  { %6041 = vmatprep.subr.mxu0 %v5310_v14 }
 0x759   :  { %6042 = vmatpush3.msra.mxu0 %v5310_v14 }
 0x75a   :  { %6043 = vmatprep.subr.mxu0 %v5309_v18 }
 0x75b   :  { %6044 = vmatpush3.msra.mxu0 %v5309_v18 }
 0x75c   :  { %6059 = vmatprep.subr.mxu0 %v5328_v15 }
 0x814   :  { %v6014_v57 = vpop.f32.mrf.mxu0 }
 0x815   :  { %v2519_v58 = vadd.f32 %v6014_v57, %v5288_v56  ;;  %v5330_v57 = vld [vmem:[%s7412_s2 + $0x328] sm:$0xff] }
 0x816   :  { %v2513_v59 = vpop.f32.mrf.mxu0 }
 0x817   :  { %v2514_v60 = vadd.f32 %v5288_v56, %v2513_v59  ;;  %v2523_v61 = vadd.f32 %v2519_v58, %v2334_v40  ;;  %v5325_v40 = vld [vmem:[%s7412_s2 + $0x300] sm:$0xff]  ;;  %v5351_v56 = vld [vmem:[%s7412_s2 + $0x390] sm:$0xff]  ;;  %v5350_v58 = vld [vmem:[%s7412_s2 + $0x388] sm:$0xff] }
 0x818   :  { %v5329_v59 = vld [vmem:[%s7412_s2 + $0x320] sm:$0xff] }
 0x819   :  { %v2529_v62 = vsel %vm179_vm2, %v2523_v61, 0.0  ;;  %v2522_v63 = vadd.f32 %v2514_v60, %v2333_v39  ;;  %v5305_v39 = vld [vmem:[%s7412_s2 + $0x2a0] sm:$0xff] }
 0x81a   :  { %2530 = vadd.xlane.f32.xlu1 %v2529_v62  ;;  %v5349_v60 = vld [vmem:[%s7412_s2 + $0x380] sm:$0xff]  ;;  %v5360_v62 = vld [vmem:[%s7412_s2 + $0x3d8] sm:$0xff] }
 0x81b   :  { %v2526_v0 = vsel %vm179_vm2, %v2522_v63, 0.0 }
 0x81c   :  { %2527 = vadd.xlane.f32.xlu0 %v2526_v0  ;;  %v5359_v0 = vld [vmem:[%s7412_s2 + $0x3d0] sm:$0xff] }
 0x8a3   :  { %v2531_v1 = vpop.xlane.xlu1 %2530 }
 0x8a4   :  { %v2533_v2 = vmul.f32 0.03125, %v2531_v1  ;;  %v5338_v1 = vld [vmem:[%s7412_s2 + $0x368] sm:$0xff] }
 0x8a5   :  { %v2528_v3 = vpop.xlane.xlu0 %2527 }
 0x8a6   :  { %v2535_v4 = vsub.f32 %v2523_v61, %v2533_v2  ;;  %v2532_v5 = vmul.f32 0.03125, %v2528_v3  ;;  %v5340_v61 = vld [vmem:[%s7412_s2 + $0x378] sm:$0xff]  ;;  %v5358_v2 = vld [vmem:[%s7412_s2 + $0x3c8] sm:$0xff]  ;;  %v5337_v3 = vld [vmem:[%s7412_s2 + $0x360] sm:$0xff] }
 0x8a8   :  { %v2534_v6 = vsub.f32 %v2522_v63, %v2532_v5  ;;  %v2537_v7 = vmul.f32 %v2535_v4, %v2535_v4  ;;  %v5339_v63 = vld [vmem:[%s7412_s2 + $0x370] sm:$0xff]  ;;  %v5356_v5 = vld [vmem:[%s7412_s2 + $0x3b8] sm:$0xff] }
 0x8aa   :  { %v2541_v8 = vsel %vm179_vm2, %v2537_v7, 0.0  ;;  %v2536_v9 = vmul.f32 %v2534_v6, %v2534_v6  ;;  %v5354_v7 = vld [vmem:[%s7412_s2 + $0x3a8] sm:$0xff] }
 0x8ab   :  { %2542 = vadd.xlane.f32.xlu1 %v2541_v8  ;;  %v5353_v8 = vld [vmem:[%s7412_s2 + $0x3a0] sm:$0xff] }
 0x8ac   :  { %v2538_v10 = vsel %vm179_vm2, %v2536_v9, 0.0  ;;  %v5364_v9 = vld [vmem:[%s7412_s2 + $0x3f8] sm:$0xff] }
 0x8ad   :  { %2539 = vadd.xlane.f32.xlu0 %v2538_v10  ;;  %v5363_v10 = vld [vmem:[%s7412_s2 + $0x3f0] sm:$0xff] }
 0x934   :  { %v2543_v42 = vpop.xlane.xlu1 %2542 }
 0x935   :  { %v2545_v16 = vmul.f32 0.03125, %v2543_v42 }
 0x936   :  { %v2540_v19 = vpop.xlane.xlu0 %2539 }
 0x937   :  { %v2547_v20 = vadd.f32 1e-05, %v2545_v16  ;;  %v2544_v21 = vmul.f32 0.03125, %v2540_v19 }
 0x939   :  { %6332 = vrsqrt.f32 %v2547_v20  ;;  %v2546_v22 = vadd.f32 1e-05, %v2544_v21  ;;  %v5294_v21 = vld [vmem:[%s7412_s2 + $0x488] sm:$0xff] }
 0x93b   :  { %6334 = vrsqrt.f32 %v2546_v22  ;;  %v5297_v22 = vld [vmem:[%s7412_s2 + $0x4c0] sm:$0xff] }
 0x946   :  { %v6333_v23 = vpop.eup %6332 }
 0x947   :  { %v2551_v25 = vmul.f32 %v6333_v23, %v2535_v4  ;;  %v5357_v4 = vld [vmem:[%s7412_s2 + $0x3c0] sm:$0xff] }
 0x948   :  { %v6335_v26 = vpop.eup %6334 }
 0x949   :  { %v2550_v27 = vmul.f32 %v6335_v26, %v2534_v6  ;;  %v2557_v28 = vmul.f32 %v5291_v24, %v2551_v25  ;;  %v5355_v6 = vld [vmem:[%s7412_s2 + $0x3b0] sm:$0xff] }
 0x94b   :  { %v2556_v30 = vmul.f32 %v5291_v24, %v2550_v27  ;;  %v6966_v34 = vadd.f32 %v5292_v29, %v2557_v28  ;;  %v5298_v28 = vld [vmem:[%s7412_s2 + $0x4c8] sm:$0xff] }
 0x94d   :  { %v6964_v33 = vadd.f32 %v5292_v29, %v2556_v30 }
 0x94f   :  { %6023 = vmatprep.mubr.msk.f32.mxu1 %vm179_vm2, %v6964_v33  ;;  %6045 = vmatprep.mubr.msk.f32.mxu0 %vm179_vm2, %v6964_v33 }
 0x950   :  { %6024 = vmatmul.mubr.msk.f32.vlgmr.msra.gmra.mxu1 %vm179_vm2, %v6966_v34  ;;  %6046 = vmatmul.mubr.msk.f32.vlgmr.msra.gmra.mxu0 %vm179_vm2, %v6966_v34 }
 0x951   :  { %6027 = vmatpush3.msra.mxu1 %v5308_v17  ;;  %6060 = vmatpush3.msra.mxu0 %v5328_v15  ;;  %v5295_v15 = vld [vmem:[%s7412_s2 + $0x4a0] sm:$0xff] }
 0x952   :  { %6028 = vmatprep.subr.mxu1 %v5307_v35  ;;  %6034 = vmatprep.mubr.msk.f32.mxu1 %vm179_vm2, %v6964_v33 }
 0x953   :  { %6061 = vmatprep.subr.mxu0 %v5327_v36  ;;  %6067 = vmatprep.mubr.msk.f32.mxu0 %vm179_vm2, %v6964_v33 }
 0x954   :  { %6029 = vmatpush3.msra.mxu1 %v5307_v35  ;;  %6062 = vmatpush3.msra.mxu0 %v5327_v36 }
 0x955   :  { %6030 = vmatprep.subr.mxu1 %v5306_v37  ;;  %6063 = vmatprep.subr.mxu0 %v5326_v38 }
 0x956   :  { %6031 = vmatpush3.msra.mxu1 %v5306_v37  ;;  %6064 = vmatpush3.msra.mxu0 %v5326_v38 }
 0x957   :  { %6032 = vmatprep.subr.mxu1 %v5305_v39  ;;  %6065 = vmatprep.subr.mxu0 %v5325_v40 }
 0x958   :  { %6033 = vmatpush3.msra.mxu1 %v5305_v39  ;;  %6066 = vmatpush3.msra.mxu0 %v5325_v40  ;;  %v5296_v39 = vld [vmem:[%s7412_s2 + $0x4a8] sm:$0xff]  ;;  %v5299_v40 = vld [vmem:[%s7412_s2 + $0x4e0] sm:$0xff] }
 0x959   :  { %6035 = vmatmul.mubr.msk.f32.vlgmr.msra.gmra.mxu1 %vm179_vm2, %v6966_v34  ;;  %6048 = vmatprep.subr.mxu1 %v5316_v43 }
 0x95a   :  { %6068 = vmatmul.mubr.msk.f32.vlgmr.msra.gmra.mxu0 %vm179_vm2, %v6966_v34  ;;  %6081 = vmatprep.subr.mxu0 %v5336_v44 }
 0x95b   :  { %6049 = vmatpush3.msra.mxu1 %v5316_v43  ;;  %6056 = vmatprep.mubr.msk.f32.mxu1 %vm179_vm2, %v6964_v33 }
 0x95c   :  { %6082 = vmatpush3.msra.mxu0 %v5336_v44  ;;  %6089 = vmatprep.mubr.msk.f32.mxu0 %vm179_vm2, %v6964_v33 }
 0x95d   :  { %6050 = vmatprep.subr.mxu1 %v5315_v45  ;;  %6083 = vmatprep.subr.mxu0 %v5335_v47 }
 0x95e   :  { %6051 = vmatpush3.msra.mxu1 %v5315_v45  ;;  %6084 = vmatpush3.msra.mxu0 %v5335_v47 }
 0x95f   :  { %6052 = vmatprep.subr.mxu1 %v5314_v48  ;;  %6085 = vmatprep.subr.mxu0 %v5334_v50 }
 0x960   :  { %6053 = vmatpush3.msra.mxu1 %v5314_v48  ;;  %6086 = vmatpush3.msra.mxu0 %v5334_v50  ;;  %v5300_v48 = vld [vmem:[%s7412_s2 + $0x4e8] sm:$0xff] }
 0x961   :  { %6054 = vmatprep.subr.mxu1 %v5313_v51  ;;  %6087 = vmatprep.subr.mxu0 %v5333_v52 }
 0x962   :  { %6055 = vmatpush3.msra.mxu1 %v5313_v51  ;;  %6088 = vmatpush3.msra.mxu0 %v5333_v52 }
 0x963   :  { %6057 = vmatmul.mubr.msk.f32.vlgmr.msra.gmra.mxu1 %vm179_vm2, %v6966_v34  ;;  %6070 = vmatprep.subr.mxu1 %v5332_v53 }
 0x964   :  { %6090 = vmatmul.mubr.msk.f32.vlgmr.msra.gmra.mxu0 %vm179_vm2, %v6966_v34  ;;  %6103 = vmatprep.subr.mxu0 %v5352_v54 }
 0x965   :  { %6071 = vmatpush3.msra.mxu1 %v5332_v53  ;;  %6078 = vmatprep.mubr.msk.f32.mxu1 %vm179_vm2, %v6964_v33 }
 0x966   :  { %6104 = vmatpush3.msra.mxu0 %v5352_v54  ;;  %6111 = vmatprep.mubr.msk.f32.mxu0 %vm179_vm2, %v6964_v33 }
 0x967   :  { %6072 = vmatprep.subr.mxu1 %v5331_v55  ;;  %6105 = vmatprep.subr.mxu0 %v5351_v56 }
 0x968   :  { %6073 = vmatpush3.msra.mxu1 %v5331_v55  ;;  %6106 = vmatpush3.msra.mxu0 %v5351_v56 }
 0x969   :  { %6074 = vmatprep.subr.mxu1 %v5330_v57  ;;  %6107 = vmatprep.subr.mxu0 %v5350_v58 }
 0x96a   :  { %6075 = vmatpush3.msra.mxu1 %v5330_v57  ;;  %6108 = vmatpush3.msra.mxu0 %v5350_v58 }
 0x96b   :  { %6076 = vmatprep.subr.mxu1 %v5329_v59  ;;  %6109 = vmatprep.subr.mxu0 %v5349_v60 }
 0x96c   :  { %6077 = vmatpush3.msra.mxu1 %v5329_v59  ;;  %6110 = vmatpush3.msra.mxu0 %v5349_v60 }
 0x96d   :  { %6079 = vmatmul.mubr.msk.f32.vlgmr.msra.gmra.mxu1 %vm179_vm2, %v6966_v34  ;;  %6092 = vmatprep.subr.mxu1 %v5340_v61 }
 0x96e   :  { %6112 = vmatmul.mubr.msk.f32.vlgmr.msra.gmra.mxu0 %vm179_vm2, %v6966_v34  ;;  %6125 = vmatprep.subr.mxu0 %v5360_v62 }
 0x96f   :  { %6093 = vmatpush3.msra.mxu1 %v5340_v61  ;;  %6100 = vmatprep.mubr.msk.f32.mxu1 %vm179_vm2, %v6964_v33 }
 0x970   :  { %6126 = vmatpush3.msra.mxu0 %v5360_v62  ;;  %6133 = vmatprep.mubr.msk.f32.mxu0 %vm179_vm2, %v6964_v33 }
 0x971   :  { %6094 = vmatprep.subr.mxu1 %v5339_v63  ;;  %6127 = vmatprep.subr.mxu0 %v5359_v0 }
 0x972   :  { %6095 = vmatpush3.msra.mxu1 %v5339_v63  ;;  %6128 = vmatpush3.msra.mxu0 %v5359_v0 }
 0x973   :  { %6096 = vmatprep.subr.mxu1 %v5338_v1  ;;  %6129 = vmatprep.subr.mxu0 %v5358_v2 }
 0x974   :  { %6097 = vmatpush3.msra.mxu1 %v5338_v1  ;;  %6130 = vmatpush3.msra.mxu0 %v5358_v2 }
 0x975   :  { %6098 = vmatprep.subr.mxu1 %v5337_v3  ;;  %6131 = vmatprep.subr.mxu0 %v5357_v4 }
 0x976   :  { %6099 = vmatpush3.msra.mxu1 %v5337_v3  ;;  %6132 = vmatpush3.msra.mxu0 %v5357_v4 }
 0x977   :  { %6101 = vmatmul.mubr.msk.f32.vlgmr.msra.gmra.mxu1 %vm179_vm2, %v6966_v34  ;;  %6114 = vmatprep.subr.mxu1 %v5356_v5 }
 0x978   :  { %6134 = vmatmul.mubr.msk.f32.vlgmr.msra.gmra.mxu0 %vm179_vm2, %v6966_v34  ;;  %6115 = vmatpush3.msra.mxu1 %v5356_v5 }
 0x979   :  { %6122 = vmatprep.mubr.msk.f32.mxu1 %vm179_vm2, %v6964_v33  ;;  %6116 = vmatprep.subr.mxu1 %v5355_v6 }
 0x97a   :  { %6117 = vmatpush3.msra.mxu1 %v5355_v6 }
 0x97b   :  { %6118 = vmatprep.subr.mxu1 %v5354_v7 }
 0x97c   :  { %6119 = vmatpush3.msra.mxu1 %v5354_v7 }
 0x97d   :  { %6120 = vmatprep.subr.mxu1 %v5353_v8 }
 0x97e   :  { %6121 = vmatpush3.msra.mxu1 %v5353_v8 }
 0x97f   :  { %6123 = vmatmul.mubr.msk.f32.vlgmr.msra.gmra.mxu1 %vm179_vm2, %v6966_v34  ;;  %6136 = vmatprep.subr.mxu1 %v5364_v9 }
 0x980   :  { %6137 = vmatpush3.msra.mxu1 %v5364_v9  ;;  %6144 = vmatprep.mubr.msk.f32.mxu1 %vm179_vm2, %v6964_v33 }
 0x981   :  { %6138 = vmatprep.subr.mxu1 %v5363_v10 }
 0x982   :  { %6139 = vmatpush3.msra.mxu1 %v5363_v10 }
 0x983   :  { %6140 = vmatprep.subr.mxu1 %v5362_v11 }
 0x984   :  { %6141 = vmatpush3.msra.mxu1 %v5362_v11 }
 0x985   :  { %6142 = vmatprep.subr.mxu1 %v5361_v31 }
 0x986   :  { %6143 = vmatpush3.msra.mxu1 %v5361_v31 }
 0x987   :  { %6145 = vmatmul.mubr.msk.f32.vlgmr.msra.gmra.mxu1 %vm179_vm2, %v6966_v34 }
 0xa10   :  { %v6025_v12 = vpop.f32.mrf.mxu1  ;;  %v6047_v32 = vpop.f32.mrf.mxu0 }
 0xa11   :  { %v2668_v23 = vadd.f32 %v6025_v12, %v5294_v21  ;;  %v2818_v29 = vadd.f32 %v6047_v32, %v5298_v28 }
 0xa12   :  { %v2662_v41 = vpop.f32.mrf.mxu1  ;;  %v2812_v18 = vpop.f32.mrf.mxu0 }
 0xa13   :  { %v2663_v14 = vadd.f32 %v5293_v13, %v2662_v41  ;;  %v2813_v24 = vadd.f32 %v5297_v22, %v2812_v18 }
 0xa15   :  { %6151 = vmatprep.mubr.msk.f32.mxu0 %vm1120_vm3, %v2663_v14 }
 0xa19   :  { %v6036_v17 = vpop.f32.mrf.mxu1 }
 0xa1a   :  { %v6069_v42 = vpop.f32.mrf.mxu0  ;;  %v2743_v43 = vadd.f32 %v6036_v17, %v5296_v39 }
 0xa1b   :  { %6147 = vmatprep.subr.msk.mxu0 %vm1120_vm3, %v6069_v42  ;;  %v2737_v16 = vpop.f32.mrf.mxu1 }
 0xa1c   :  { %v2738_v19 = vadd.f32 %v5295_v15, %v2737_v16  ;;  %v2979_v20 = vpop.f32.mrf.mxu0  ;;  %6148 = vmatpush3.xpose.msk.msra.mxu0 %vm1120_vm3, %v6069_v42 }
 0xa1d   :  { %6149 = vmatprep.subr.msk.mxu0 %vm1120_vm3, %v2979_v20 }
 0xa1e   :  { %6158 = vmatprep.mubr.msk.f32.mxu1 %vm1120_vm3, %v2738_v19 }
 0xa20   :  { %6150 = vmatpush3.xpose.msk.msra.mxu0 %vm1120_vm3, %v2979_v20 }
 0xa23   :  { %6152 = vmatmul.mubr.msk.f32.vlgmr.msra.gmra.mxu0 %vm1120_vm3, %v2668_v23  ;;  %v6058_v27 = vpop.f32.mrf.mxu1 }
 0xa24   :  { %v6091_v25 = vpop.f32.mrf.mxu0  ;;  %6165 = vmatprep.mubr.msk.f32.mxu0 %vm1120_vm3, %v2813_v24  ;;  %v2893_v51 = vadd.f32 %v6058_v27, %v5300_v48 }
 0xa25   :  { %6161 = vmatprep.subr.msk.mxu0 %vm1120_vm3, %v6091_v25  ;;  %v2887_v30 = vpop.f32.mrf.mxu1 }
 0xa26   :  { %v3129_v26 = vpop.f32.mrf.mxu0  ;;  %6162 = vmatpush3.xpose.msk.msra.mxu0 %vm1120_vm3, %v6091_v25  ;;  %v2888_v44 = vadd.f32 %v5299_v40, %v2887_v30 }
 0xa27   :  { %6163 = vmatprep.subr.msk.mxu0 %vm1120_vm3, %v3129_v26 }
 0xa2a   :  { %6164 = vmatpush3.xpose.msk.msra.mxu0 %vm1120_vm3, %v3129_v26 }
 0xa2d   :  { %v6080_v35 = vpop.f32.mrf.mxu1  ;;  %6166 = vmatmul.mubr.msk.f32.vlgmr.msra.gmra.mxu0 %vm1120_vm3, %v2818_v29 }
 0xa2e   :  { %v6113_v36 = vpop.f32.mrf.mxu0  ;;  %6154 = vmatprep.subr.msk.mxu1 %vm1120_vm3, %v6080_v35 }
 0xa2f   :  { %6175 = vmatprep.subr.mxu0 %v6113_v36  ;;  %v3054_v37 = vpop.f32.mrf.mxu1  ;;  %6155 = vmatpush3.xpose.msk.msra.mxu1 %vm1120_vm3, %v6080_v35 }
 0xa30   :  { %v3296_v38 = vpop.f32.mrf.mxu0  ;;  %6176 = vmatpush3.msra.mxu0 %v6113_v36  ;;  %6156 = vmatprep.subr.msk.mxu1 %vm1120_vm3, %v3054_v37 }
 0xa31   :  { %6177 = vmatprep.subr.mxu0 %v3296_v38 }
 0xa32   :  { %6178 = vmatpush3.msra.mxu0 %v3296_v38 }
 0xa33   :  { %6157 = vmatpush3.xpose.msk.msra.mxu1 %vm1120_vm3, %v3054_v37 }
 0xa36   :  { %6159 = vmatmul.mubr.msk.f32.vlgmr.msra.gmra.mxu1 %vm1120_vm3, %v2743_v43 }
 0xa37   :  { %v6102_v45 = vpop.f32.mrf.mxu1  ;;  %6172 = vmatprep.mubr.msk.f32.mxu1 %vm1120_vm3, %v2888_v44 }
 0xa38   :  { %6168 = vmatprep.subr.msk.mxu1 %vm1120_vm3, %v6102_v45  ;;  %v6135_v50 = vpop.f32.mrf.mxu0 }
 0xa39   :  { %v3204_v47 = vpop.f32.mrf.mxu1  ;;  %6169 = vmatpush3.xpose.msk.msra.mxu1 %vm1120_vm3, %v6102_v45 }
 0xa3a   :  { %6170 = vmatprep.subr.msk.mxu1 %vm1120_vm3, %v3204_v47  ;;  %v3446_v53 = vpop.f32.mrf.mxu0 }
 0xa3d   :  { %6171 = vmatpush3.xpose.msk.msra.mxu1 %vm1120_vm3, %v3204_v47 }
 0xa3e   :  { %6189 = vmatprep.subr.mxu1 %v6135_v50 }
 0xa3f   :  { %v7177_v52 = vpop.f32.mrf.mxu1 }
 0xa40   :  { %6173 = vmatmul.mubr.msk.f32.vlgmr.msra.gmra.mxu1 %vm1120_vm3, %v2893_v51  ;;  %6182 = vmatprep.subr.mxu0 %v7177_v52 }
 0xa41   :  { %6190 = vmatpush3.msra.mxu1 %v6135_v50  ;;  %v7185_v60 = vpop.f32.mrf.mxu1 }
 0xa42   :  { %6191 = vmatprep.subr.mxu1 %v3446_v53 }
 0xa43   :  { %6192 = vmatpush3.msra.mxu1 %v3446_v53 }
 0xa47   :  { %v7187_v61 = vpop.f32.mrf.mxu1 }
 0xa49   :  { %v7189_v62 = vpop.f32.mrf.mxu1 }
 0xae3   :  { %v6153_v54 = vpop.f32.mrf.mxu0 }
 0xae4   :  { %v3614_v55 = vadd.f32 %v6153_v54, %v6727_v49 }
 0xae5   :  { %v3608_v56 = vpop.f32.mrf.mxu0 }
 0xae6   :  { %v3609_v57 = vadd.f32 %v3608_v56, %v6725_v46  ;;  %v3881_v58 = vsel %vm1469_vm9, %v3614_v55, -inf }
 0xae7   :  { %3882 = vmax.xlane.f32.xlu1 %v3881_v58 }
 0xae8   :  { %v3878_v59 = vsel %vm1469_vm9, %v3609_v57, -inf }
 0xae9   :  { %3879 = vmax.xlane.f32.xlu0 %v3878_v59 }
 0xaed   :  { %v6167_v63 = vpop.f32.mrf.mxu0 }
 0xaee   :  { %v3788_v4 = vadd.f32 %v6167_v63, %v6727_v49  ;;  %v5400_v63 = vld [vmem:[%s7412_s2 + $0x418] sm:$0xff] }
 0xaef   :  { %v3782_v2 = vpop.f32.mrf.mxu0  ;;  %6203 = vmatprep.subr.msk.mxu1 %vm1120_vm3, %v5400_v63 }
 0xaf0   :  { %v3783_v7 = vadd.f32 %v3782_v2, %v6725_v46  ;;  %v3893_v9 = vsel %vm1469_vm9, %v3788_v4, -inf }
 0xaf2   :  { %v3890_v10 = vsel %vm1469_vm9, %v3783_v7, -inf }
 0xaf6   :  { %v6160_v0 = vpop.f32.mrf.mxu1 }
 0xaf7   :  { %v3701_v1 = vadd.f32 %v6160_v0, %v6727_v49 }
 0xaf8   :  { %v3695_v3 = vpop.f32.mrf.mxu1 }
 0xaf9   :  { %v3696_v5 = vadd.f32 %v3695_v3, %v6725_v46  ;;  %v3887_v6 = vsel %vm1469_vm9, %v3701_v1, -inf }
 0xafa   :  { %3888 = vmax.xlane.f32.xlu1 %v3887_v6 }
 0xafb   :  { %v3884_v8 = vsel %vm1469_vm9, %v3696_v5, -inf }
 0xafc   :  { %3885 = vmax.xlane.f32.xlu0 %v3884_v8 }
 0xafe   :  { %3894 = vmax.xlane.f32.xlu1 %v3893_v9 }
 0xb00   :  { %v6174_v11 = vpop.f32.mrf.mxu1  ;;  %3891 = vmax.xlane.f32.xlu0 %v3890_v10 }
 0xb01   :  { %v3875_v31 = vadd.f32 %v6174_v11, %v6727_v49 }
 0xb02   :  { %v3869_v12 = vpop.f32.mrf.mxu1 }
 0xb03   :  { %v3870_v13 = vadd.f32 %v3869_v12, %v6725_v46  ;;  %v3899_v41 = vsel %vm1469_vm9, %v3875_v31, -inf }
 0xb04   :  { %3900 = vmax.xlane.f32.xlu1 %v3899_v41 }
 0xb05   :  { %v3896_v14 = vsel %vm1469_vm9, %v3870_v13, -inf }
 0xb06   :  { %3897 = vmax.xlane.f32.xlu0 %v3896_v14 }
 0xb70   :  { %v3883_v32 = vpop.xlane.xlu1 %3882 }
 0xb71   :  { %v3903_v18 = vsub.f32 %v3614_v55, %v3883_v32 }
 0xb72   :  { %v3880_v17 = vpop.xlane.xlu0 %3879 }
 0xb73   :  { %v3912_v15 = vmul.f32 1.442695, %v3903_v18  ;;  %v3902_v42 = vsub.f32 %v3609_v57, %v3880_v17  ;;  %v5399_v18 = vld [vmem:[%s7412_s2 + $0x410] sm:$0xff] }
 0xb75   :  { %6336 = vpow2.f32 %v3912_v15  ;;  %v3910_v16 = vmul.f32 1.442695, %v3902_v42  ;;  %v5398_v42 = vld [vmem:[%s7412_s2 + $0x408] sm:$0xff] }
 0xb77   :  { %6338 = vpow2.f32 %v3910_v16  ;;  %v5397_v16 = vld [vmem:[%s7412_s2 + $0x400] sm:$0xff] }
 0xb82   :  { %v6337_v19 = vpop.eup %6336 }
 0xb83   :  { %v3889_v20 = vpop.xlane.xlu1 %3888  ;;  %v3929_v49 = vsel %vm1469_vm9, %v6337_v19, 0.0 }
 0xb84   :  { %v6339_v21 = vpop.eup %6338  ;;  %v3905_v46 = vsub.f32 %v3701_v1, %v3889_v20  ;;  %3930 = vadd.xlane.f32.xlu1 %v3929_v49  ;;  %v5403_v20 = vld [vmem:[%s7412_s2 + $0x430] sm:$0xff]  ;;  %v5408_v49 = vld [vmem:[%s7412_s2 + $0x458] sm:$0xff] }
 0xb85   :  { %v3886_v22 = vpop.xlane.xlu0 %3885  ;;  %v3926_v23 = vsel %vm1469_vm9, %v6339_v21, 0.0 }
 0xb86   :  { %v3916_v24 = vmul.f32 1.442695, %v3905_v46  ;;  %v3904_v25 = vsub.f32 %v3696_v5, %v3886_v22  ;;  %3927 = vadd.xlane.f32.xlu0 %v3926_v23  ;;  %v5401_v46 = vld [vmem:[%s7412_s2 + $0x420] sm:$0xff]  ;;  %v5412_v22 = vld [vmem:[%s7412_s2 + $0x478] sm:$0xff] }
 0xb87   :  { %v3895_v26 = vpop.xlane.xlu1 %3894 }
 0xb88   :  { %6340 = vpow2.f32 %v3916_v24  ;;  %v3914_v27 = vmul.f32 1.442695, %v3904_v25  ;;  %v3907_v28 = vsub.f32 %v3788_v4, %v3895_v26  ;;  %v5407_v25 = vld [vmem:[%s7412_s2 + $0x450] sm:$0xff]  ;;  %v5406_v26 = vld [vmem:[%s7412_s2 + $0x448] sm:$0xff] }
 0xb89   :  { %v3892_v29 = vpop.xlane.xlu0 %3891 }
 0xb8a   :  { %6342 = vpow2.f32 %v3914_v27  ;;  %v3920_v30 = vmul.f32 1.442695, %v3907_v28  ;;  %v3906_v35 = vsub.f32 %v3783_v7, %v3892_v29  ;;  %v5405_v27 = vld [vmem:[%s7412_s2 + $0x440] sm:$0xff] }
 0xb8c   :  { %6344 = vpow2.f32 %v3920_v30  ;;  %v3918_v36 = vmul.f32 1.442695, %v3906_v35  ;;  %v5411_v30 = vld [vmem:[%s7412_s2 + $0x470] sm:$0xff] }
 0xb8d   :  { %v3901_v37 = vpop.xlane.xlu1 %3900 }
 0xb8e   :  { %6346 = vpow2.f32 %v3918_v36  ;;  %v3909_v38 = vsub.f32 %v3875_v31, %v3901_v37  ;;  %v5410_v37 = vld [vmem:[%s7412_s2 + $0x468] sm:$0xff] }
 0xb8f   :  { %v3898_v39 = vpop.xlane.xlu0 %3897 }
 0xb90   :  { %v3924_v40 = vmul.f32 1.442695, %v3909_v38  ;;  %v3908_v43 = vsub.f32 %v3870_v13, %v3898_v39  ;;  %v5409_v39 = vld [vmem:[%s7412_s2 + $0x460] sm:$0xff] }
 0xb92   :  { %6348 = vpow2.f32 %v3924_v40  ;;  %v3922_v44 = vmul.f32 1.442695, %v3908_v43 }
 0xb94   :  { %6350 = vpow2.f32 %v3922_v44 }
 0xb95   :  { %v6341_v45 = vpop.eup %6340 }
 0xb96   :  { %v3935_v47 = vsel %vm1469_vm9, %v6341_v45, 0.0 }
 0xb97   :  { %v6343_v48 = vpop.eup %6342  ;;  %3936 = vadd.xlane.f32.xlu1 %v3935_v47 }
 0xb98   :  { %v3932_v50 = vsel %vm1469_vm9, %v6343_v48, 0.0 }
 0xb99   :  { %v6345_v51 = vpop.eup %6344  ;;  %3933 = vadd.xlane.f32.xlu0 %v3932_v50 }
 0xb9a   :  { %v3941_v53 = vsel %vm1469_vm9, %v6345_v51, 0.0 }
 0xb9b   :  { %v6347_v54 = vpop.eup %6346  ;;  %3942 = vadd.xlane.f32.xlu1 %v3941_v53 }
 0xb9c   :  { %v3938_v55 = vsel %vm1469_vm9, %v6347_v54, 0.0 }
 0xb9d   :  { %3939 = vadd.xlane.f32.xlu0 %v3938_v55 }
 0xb9f   :  { %v6349_v56 = vpop.eup %6348 }
 0xba0   :  { %v3947_v57 = vsel %vm1469_vm9, %v6349_v56, 0.0 }
 0xba1   :  { %v6351_v58 = vpop.eup %6350  ;;  %3948 = vadd.xlane.f32.xlu1 %v3947_v57 }
 0xba2   :  { %v3944_v59 = vsel %vm1469_vm9, %v6351_v58, 0.0 }
 0xba3   :  { %3945 = vadd.xlane.f32.xlu0 %v3944_v59 }
 0xc0d   :  { %v3931_v0 = vpop.xlane.xlu1 %3930 }
 0xc0e   :  { %6352 = vrcp.f32 %v3931_v0 }
 0xc0f   :  { %v3928_v1 = vpop.xlane.xlu0 %3927 }
 0xc10   :  { %6354 = vrcp.f32 %v3928_v1 }
 0xc1b   :  { %v6353_v2 = vpop.eup %6352 }
 0xc1c   :  { %v3959_v5 = vmul.f32 %v6353_v2, %v6337_v19  ;;  %v5404_v19 = vld [vmem:[%s7412_s2 + $0x438] sm:$0xff] }
 0xc1d   :  { %v6355_v3 = vpop.eup %6354  ;;  %v5437_v2 = vld [vmem:[%s7413_s3 + $0xd8] ss:$0 sm:$0xff] }
 0xc1e   :  { %v3958_v4 = vmul.f32 %v6355_v3, %v6339_v21  ;;  %v5402_v21 = vld [vmem:[%s7412_s2 + $0x428] sm:$0xff] }
 0xc20   :  { %v3937_v6 = vpop.xlane.xlu1 %3936  ;;  %6179 = vmatprep.mubr.msk.f32.mxu0 %vm1469_vm9, %v3958_v4 }
 0xc21   :  { %6180 = vmatmul.mubr.msk.f32.vlgmr.msra.gmra.mxu0 %vm1469_vm9, %v3959_v5  ;;  %6356 = vrcp.f32 %v3937_v6 }
 0xc22   :  { %v3934_v7 = vpop.xlane.xlu0 %3933  ;;  %6183 = vmatpush3.msra.mxu0 %v7177_v52 }
 0xc23   :  { %6358 = vrcp.f32 %v3934_v7  ;;  %6184 = vmatprep.subr.mxu0 %v7185_v60 }
 0xc24   :  { %v3943_v8 = vpop.xlane.xlu1 %3942  ;;  %6185 = vmatpush3.msra.mxu0 %v7185_v60 }
 0xc25   :  { %6196 = vmatprep.subr.mxu0 %v7187_v61  ;;  %6360 = vrcp.f32 %v3943_v8 }
 0xc26   :  { %v3940_v9 = vpop.xlane.xlu0 %3939 }
 0xc27   :  { %6362 = vrcp.f32 %v3940_v9 }
 0xc2a   :  { %v3949_v10 = vpop.xlane.xlu1 %3948 }
 0xc2b   :  { %6364 = vrcp.f32 %v3949_v10 }
 0xc2c   :  { %v3946_v11 = vpop.xlane.xlu0 %3945 }
 0xc2d   :  { %6366 = vrcp.f32 %v3946_v11 }
 0xc2e   :  { %v6357_v31 = vpop.eup %6356 }
 0xc2f   :  { %v3961_v41 = vmul.f32 %v6357_v31, %v6341_v45 }
 0xc30   :  { %v6359_v12 = vpop.eup %6358 }
 0xc31   :  { %v3960_v13 = vmul.f32 %v6359_v12, %v6343_v48 }
 0xc32   :  { %v6361_v52 = vpop.eup %6360 }
 0xc33   :  { %6186 = vmatprep.mubr.msk.f32.mxu0 %vm1469_vm9, %v3960_v13  ;;  %v3963_v32 = vmul.f32 %v6361_v52, %v6345_v51 }
 0xc34   :  { %v6363_v14 = vpop.eup %6362  ;;  %6187 = vmatmul.mubr.msk.f32.vlgmr.msra.gmra.mxu0 %vm1469_vm9, %v3961_v41 }
 0xc35   :  { %6197 = vmatpush3.msra.mxu0 %v7187_v61  ;;  %v3962_v60 = vmul.f32 %v6363_v14, %v6347_v54 }
 0xc36   :  { %6198 = vmatprep.subr.mxu0 %v7189_v62 }
 0xc37   :  { %6199 = vmatpush3.msra.mxu0 %v7189_v62  ;;  %6193 = vmatprep.mubr.msk.f32.mxu1 %vm1469_vm9, %v3962_v60 }
 0xc38   :  { %6194 = vmatmul.mubr.msk.f32.vlgmr.msra.gmra.mxu1 %vm1469_vm9, %v3963_v32  ;;  %v6365_v17 = vpop.eup %6364  ;;  %6214 = vmatprep.subr.msk.mxu0 %vm1120_vm3, %v5404_v19 }
 0xc39   :  { %6204 = vmatpush3.xpose.msk.msra.mxu1 %vm1120_vm3, %v5400_v63  ;;  %v3965_v62 = vmul.f32 %v6365_v17, %v6349_v56 }
 0xc3a   :  { %v6367_v15 = vpop.eup %6366  ;;  %6205 = vmatprep.subr.msk.mxu1 %vm1120_vm3, %v5399_v18 }
 0xc3b   :  { %v3964_v61 = vmul.f32 %v6367_v15, %v6351_v58 }
 0xc3d   :  { %6200 = vmatprep.mubr.msk.f32.mxu0 %vm1469_vm9, %v3964_v61  ;;  %6206 = vmatpush3.xpose.msk.msra.mxu1 %vm1120_vm3, %v5399_v18  ;;  %v4744_v61 = vld [vmem:[%s7413_s3 + $0x120] sm:$0xff] }
 0xc3e   :  { %6201 = vmatmul.mubr.msk.f32.vlgmr.msra.gmra.mxu0 %vm1469_vm9, %v3965_v62  ;;  %6207 = vmatprep.subr.msk.mxu1 %vm1120_vm3, %v5398_v42  ;;  %v4742_v62 = vld [vmem:[%s7413_s3 + $0x110] sm:$0xff] }
 0xc3f   :  { %6215 = vmatpush3.xpose.msk.msra.mxu0 %vm1120_vm3, %v5404_v19  ;;  %v4840_v19 = vld [vmem:[%s7413_s3 + $0x160] sm:$0xff] }
 0xc40   :  { %6216 = vmatprep.subr.msk.mxu0 %vm1120_vm3, %v5403_v20 }
 0xc41   :  { %6208 = vmatpush3.xpose.msk.msra.mxu1 %vm1120_vm3, %v5398_v42  ;;  %v4743_v42 = vld [vmem:[%s7413_s3 + $0x118] sm:$0xff] }
 0xc42   :  { %6209 = vmatprep.subr.msk.mxu1 %vm1120_vm3, %v5397_v16 }
 0xc43   :  { %6217 = vmatpush3.xpose.msk.msra.mxu0 %vm1120_vm3, %v5403_v20  ;;  %v4839_v20 = vld [vmem:[%s7413_s3 + $0x158] sm:$0xff] }
 0xc44   :  { %6218 = vmatprep.subr.msk.mxu0 %vm1120_vm3, %v5402_v21 }
 0xc45   :  { %6210 = vmatpush3.xpose.msk.msra.mxu1 %vm1120_vm3, %v5397_v16  ;;  %v4841_v16 = vld [vmem:[%s7413_s3 + $0x168] sm:$0xff] }
 0xc46   :  { %6225 = vmatprep.subr.msk.mxu1 %vm1120_vm3, %v5408_v49 }
 0xc47   :  { %6219 = vmatpush3.xpose.msk.msra.mxu0 %vm1120_vm3, %v5402_v21 }
 0xc48   :  { %6220 = vmatprep.subr.msk.mxu0 %vm1120_vm3, %v5401_v46 }
 0xc4b   :  { %6221 = vmatpush3.xpose.msk.msra.mxu0 %vm1120_vm3, %v5401_v46 }
 0xc4c   :  { %6236 = vmatprep.subr.msk.mxu0 %vm1120_vm3, %v5412_v22 }
 0xce1   :  { %v6181_v23 = vpop.f32.mrf.mxu0 }
 0xce3   :  { %v4038_v24 = vpop.f32.mrf.mxu0 }
 0xce4   :  { %6211 = vmatprep.mubr.msk.f32.mxu1 %vm1120_vm3, %v4038_v24 }
 0xce5   :  { %6212 = vmatmul.mubr.msk.f32.vlgmr.msra.gmra.mxu1 %vm1120_vm3, %v6181_v23 }
 0xce6   :  { %6226 = vmatpush3.xpose.msk.msra.mxu1 %vm1120_vm3, %v5408_v49  ;;  %v4838_v49 = vld [vmem:[%s7413_s3 + $0x150] sm:$0xff] }
 0xce7   :  { %6227 = vmatprep.subr.msk.mxu1 %vm1120_vm3, %v5407_v25 }
 0xcea   :  { %6228 = vmatpush3.xpose.msk.msra.mxu1 %vm1120_vm3, %v5407_v25 }
 0xceb   :  { %6229 = vmatprep.subr.msk.mxu1 %vm1120_vm3, %v5406_v26 }
 0xcee   :  { %6230 = vmatpush3.xpose.msk.msra.mxu1 %vm1120_vm3, %v5406_v26 }
 0xcef   :  { %6231 = vmatprep.subr.msk.mxu1 %vm1120_vm3, %v5405_v27 }
 0xcf2   :  { %6232 = vmatpush3.xpose.msk.msra.mxu1 %vm1120_vm3, %v5405_v27  ;;  %v5438_v27 = vld [vmem:[%s7413_s3 + $0xe0] ss:$0 sm:$0xff] }
 0xcf4   :  { %v6188_v28 = vpop.f32.mrf.mxu0 }
 0xcf6   :  { %v4119_v29 = vpop.f32.mrf.mxu0 }
 0xcf7   :  { %6222 = vmatprep.mubr.msk.f32.mxu0 %vm1120_vm3, %v4119_v29 }
 0xcf8   :  { %v6195_v35 = vpop.f32.mrf.mxu1  ;;  %6223 = vmatmul.mubr.msk.f32.vlgmr.msra.gmra.mxu0 %vm1120_vm3, %v6188_v28 }
 0xcf9   :  { %6237 = vmatpush3.xpose.msk.msra.mxu0 %vm1120_vm3, %v5412_v22 }
 0xcfa   :  { %v4200_v36 = vpop.f32.mrf.mxu1  ;;  %6238 = vmatprep.subr.msk.mxu0 %vm1120_vm3, %v5411_v30 }
 0xcfb   :  { %6233 = vmatprep.mubr.msk.f32.mxu1 %vm1120_vm3, %v4200_v36  ;;  %v5439_v36 = vld [vmem:[%s7413_s3 + $0xe8] ss:$0 sm:$0xff] }
 0xcfc   :  { %6234 = vmatmul.mubr.msk.f32.vlgmr.msra.gmra.mxu1 %vm1120_vm3, %v6195_v35 }
 0xcfd   :  { %6239 = vmatpush3.xpose.msk.msra.mxu0 %vm1120_vm3, %v5411_v30 }
 0xcfe   :  { %v6202_v38 = vpop.f32.mrf.mxu0  ;;  %6240 = vmatprep.subr.msk.mxu0 %vm1120_vm3, %v5410_v37 }
 0xd00   :  { %v4281_v40 = vpop.f32.mrf.mxu0 }
 0xd01   :  { %6244 = vmatprep.mubr.msk.f32.mxu0 %vm1120_vm3, %v4281_v40  ;;  %6241 = vmatpush3.xpose.msk.msra.mxu0 %vm1120_vm3, %v5410_v37  ;;  %v4837_v40 = vld [vmem:[%s7413_s3 + $0x148] sm:$0xff] }
 0xd02   :  { %6242 = vmatprep.subr.msk.mxu0 %vm1120_vm3, %v5409_v39 }
 0xd05   :  { %6243 = vmatpush3.xpose.msk.msra.mxu0 %vm1120_vm3, %v5409_v39 }
 0xd06   :  { %6258 = vmatprep.subr.mxu0 %v4841_v16 }
 0xd08   :  { %6245 = vmatmul.mubr.msk.f32.vlgmr.msra.gmra.mxu0 %vm1120_vm3, %v6202_v38 }
 0xd09   :  { %6259 = vmatpush3.msra.mxu0 %v4841_v16 }
 0xd0a   :  { %6260 = vmatprep.subr.mxu0 %v4840_v19 }
 0xd0b   :  { %6261 = vmatpush3.msra.mxu0 %v4840_v19 }
 0xd0c   :  { %6262 = vmatprep.subr.mxu0 %v4839_v20 }
 0xd0d   :  { %6263 = vmatpush3.msra.mxu0 %v4839_v20 }
 0xd0e   :  { %6264 = vmatprep.subr.mxu0 %v4838_v49 }
 0xd0f   :  { %6265 = vmatpush3.msra.mxu0 %v4838_v49  ;;  %v4970_v49 = vld [vmem:[%s7413_s3 + $0x18] sm:$0x3] }
 0xd10   :  { %6266 = vmatprep.subr.mxu0 %v4837_v40 }
 0xd11   :  { %6267 = vmatpush3.msra.mxu0 %v4837_v40 }
 0xda5   :  { %v6213_v43 = vpop.f32.mrf.mxu1 }
 0xda6   :  { %v4686_v53 = vsel %vm179_vm2, %v6213_v43, 0.0  ;;  %v4836_v43 = vld [vmem:[%s7413_s3 + $0x140] sm:$0xff] }
 0xda7   :  { %v4391_v44 = vpop.f32.mrf.mxu1  ;;  %6268 = vmatprep.subr.mxu0 %v4836_v43 }
 0xda8   :  { %v4679_v57 = vsel %vm179_vm2, %v4391_v44, 0.0  ;;  %6269 = vmatpush3.msra.mxu0 %v4836_v43  ;;  %v4835_v44 = vld [vmem:[%s7413_s3 + $0x138] sm:$0xff] }
 0xda9   :  { %6270 = vmatprep.subr.mxu0 %v4835_v44 }
 0xdaa   :  { %6271 = vmatpush3.msra.mxu0 %v4835_v44 }
 0xdb8   :  { %v6224_v45 = vpop.f32.mrf.mxu0 }
 0xdb9   :  { %v4687_v50 = vsel %vm179_vm2, %v6224_v45, 0.0  ;;  %v4834_v45 = vld [vmem:[%s7413_s3 + $0x130] sm:$0xff] }
 0xdba   :  { %v4484_v48 = vpop.f32.mrf.mxu0  ;;  %v4688_v56 = vadd.f32 %v4687_v50, %v4686_v53  ;;  %6272 = vmatprep.subr.mxu0 %v4834_v45 }
 0xdbb   :  { %v4680_v54 = vsel %vm179_vm2, %v4484_v48, 0.0  ;;  %6273 = vmatpush3.msra.mxu0 %v4834_v45 }
 0xdbc   :  { %v6235_v47 = vpop.f32.mrf.mxu1  ;;  %v4681_v59 = vadd.f32 %v4680_v54, %v4679_v57 }
 0xdbd   :  { %v4689_v55 = vsel %vm179_vm2, %v6235_v47, 0.0  ;;  %v5440_v47 = vld [vmem:[%s7413_s3 + $0x100] ss:$0 sm:$0xff] }
 0xdbe   :  { %v4577_v51 = vpop.f32.mrf.mxu1  ;;  %v4690_v63 = vadd.f32 %v4689_v55, %v4688_v56  ;;  %v5443_v56 = vld [vmem:[%s7413_s3 + $0x108] ss:$0 sm:$0xff] }
 0xdbf   :  { %v4682_v58 = vsel %vm179_vm2, %v4577_v51, 0.0 }
 0xdc0   :  { %v4683_v3 = vadd.f32 %v4682_v58, %v4681_v59 }
 0xdc8   :  { %v6246_v0 = vpop.f32.mrf.mxu0 }
 0xdc9   :  { %v4691_v1 = vsel %vm179_vm2, %v6246_v0, 0.0 }
 0xdca   :  { %v4692_v4 = vadd.f32 %v4691_v1, %v4690_v63  ;;  %v4670_v5 = vpop.f32.mrf.mxu0 }
 0xdcb   :  { %v4684_v6 = vsel %vm179_vm2, %v4670_v5, 0.0 }
 0xdcc   :  { %v4699_v7 = vadd.f32 %v5437_v2, %v4692_v4  ;;  %v4685_v8 = vadd.f32 %v4684_v6, %v4683_v3 }
 0xdce   :  { %v4698_v9 = vadd.f32 %v5437_v2, %v4685_v8  ;;  %v4701_v10 = vadd.f32 %v4699_v7, %v6966_v34 }
 0xdd0   :  { %v4707_v11 = vsel %vm179_vm2, %v4701_v10, 0.0  ;;  %v4700_v31 = vadd.f32 %v4698_v9, %v6964_v33  ;;  %v4745_v33 = vld [vmem:[%s7413_s3 + $0x128] sm:$0xff] }
 0xdd1   :  { %4708 = vadd.xlane.f32.xlu1 %v4707_v11  ;;  %6247 = vmatprep.subr.mxu1 %v4745_v33 }
 0xdd2   :  { %v4704_v12 = vsel %vm179_vm2, %v4700_v31, 0.0  ;;  %6248 = vmatpush3.msra.mxu1 %v4745_v33 }
 0xdd3   :  { %4705 = vadd.xlane.f32.xlu0 %v4704_v12  ;;  %6249 = vmatprep.subr.mxu1 %v4744_v61 }
 0xdd4   :  { %6250 = vmatpush3.msra.mxu1 %v4744_v61  ;;  %v5447_v61 = vld [vmem:[%s7413_s3 + $0xf8] ss:$0 sm:$0xff] }
 0xdd5   :  { %6251 = vmatprep.subr.mxu1 %v4743_v42 }
 0xdd6   :  { %6252 = vmatpush3.msra.mxu1 %v4743_v42 }
 0xdd7   :  { %6253 = vmatprep.subr.mxu1 %v4742_v62 }
 0xdd8   :  { %6254 = vmatpush3.msra.mxu1 %v4742_v62 }
 0xe5a   :  { %v4709_v13 = vpop.xlane.xlu1 %4708 }
 0xe5b   :  { %v4711_v41 = vmul.f32 0.03125, %v4709_v13  ;;  %v6418_v13 = vmov 0.0  }
 0xe5c   :  { %v4706_v52 = vpop.xlane.xlu0 %4705  ;;  %6277 = vmatprep.subr.mxu1 %v6418_v13 }
 0xe5d   :  { %v4713_v14 = vsub.f32 %v4701_v10, %v4711_v41  ;;  %v4710_v60 = vmul.f32 0.03125, %v4706_v52 }
 0xe5f   :  { %v4712_v32 = vsub.f32 %v4700_v31, %v4710_v60  ;;  %v4715_v18 = vmul.f32 %v4713_v14, %v4713_v14 }
 0xe61   :  { %v4719_v17 = vsel %vm179_vm2, %v4715_v18, 0.0  ;;  %v4714_v15 = vmul.f32 %v4712_v32, %v4712_v32 }
 0xe62   :  { %4720 = vadd.xlane.f32.xlu1 %v4719_v17 }
 0xe63   :  { %v4716_v34 = vsel %vm179_vm2, %v4714_v15, 0.0  ;;  %v5446_v15 = vld [vmem:[%s7413_s3 + $0xf0] ss:$0 sm:$0xff] }
 0xe64   :  { %4717 = vadd.xlane.f32.xlu0 %v4716_v34 }
 0xeeb   :  { %v4721_v21 = vpop.xlane.xlu1 %4720 }
 0xeec   :  { %v4723_v46 = vmul.f32 0.03125, %v4721_v21  ;;  %v5045_v21 = vld [vmem:[%s7413_s3 + $0x28] sm:$0x1] }
 0xeed   :  { %v4718_v22 = vpop.xlane.xlu0 %4717 }
 0xeee   :  { %v4725_v23 = vadd.f32 1e-05, %v4723_v46  ;;  %v4722_v24 = vmul.f32 0.03125, %v4718_v22  ;;  %v6420_v46 = vmov 0  }
 0xeef   :  { %6295 = vset.pattern.permute.xlu0 %v6420_v46 }
 0xef0   :  { %6368 = vrsqrt.f32 %v4725_v23  ;;  %v4724_v25 = vadd.f32 1e-05, %v4722_v24  ;;  %v5044_v23 = vld [vmem:[%s7413_s3 + $0x20] sm:$0x1]  ;;  %s6396_s3 = scalar_lea.vmem %s5142_s13, 32 }
 0xef1   :  { %p6398_p7 = scmp.lt.s32.totalorder %s6396_s3, %s6392_s14 }
 0xef2   :  { %6370 = vrsqrt.f32 %v4724_v25 }
 0xef3   :  { %p6399_p8 = por %p6398_p7, %p6397_p6 }
 0xef5   :  { %p6400_p9 = pnand %p6399_p8, %p6393_p5 }
 0xefd   :  { %v6369_v26 = vpop.eup %6368 }
 0xefe   :  { %v4729_v28 = vmul.f32 %v6369_v26, %v4713_v14 }
 0xeff   :  { %v6371_v29 = vpop.eup %6370 }
 0xf00   :  { %v4728_v30 = vmul.f32 %v6371_v29, %v4712_v32  ;;  %v4735_v35 = vmul.f32 %v5438_v27, %v4729_v28 }
 0xf02   :  { %v4734_v37 = vmul.f32 %v5438_v27, %v4728_v30  ;;  %v4741_v39 = vadd.f32 %v5439_v36, %v4735_v35 }
 0xf04   :  { %v4740_v38 = vadd.f32 %v5439_v36, %v4734_v37 }
 0xf06   :  { %6255 = vmatprep.mubr.msk.f32.mxu1 %vm179_vm2, %v4740_v38 }
 0xf07   :  { %6256 = vmatmul.mubr.msk.f32.vlgmr.msra.gmra.mxu1 %vm179_vm2, %v4741_v39 }
 0xf08   :  { %6281 = vmatprep.mubr.msk.f32.mxu1 %vm6419_vm11, %v6418_v13 }
 0xfc7   :  { %v6257_v48 = vpop.f32.mrf.mxu1 }
 0xfc8   :  { %v4829_v50 = vadd.f32 %v6257_v48, %v5440_v47 }
 0xfc9   :  { %v4823_v51 = vpop.f32.mrf.mxu1 }
 0xfca   :  { %v4824_v53 = vadd.f32 %v5440_v47, %v4823_v51  ;;  %v4833_v55 = vmax.f32 %v4829_v50, 0.0 }
 0xfcc   :  { %v4832_v54 = vmax.f32 %v4824_v53, 0.0 }
 0xfce   :  { %6274 = vmatprep.mubr.msk.f32.mxu0 %vm2440_vm10, %v4832_v54 }
 0xfcf   :  { %6275 = vmatmul.mubr.msk.f32.vlgmr.msra.gmra.mxu0 %vm2440_vm10, %v4833_v55 }
0x108f   :  { %v6276_v57 = vpop.f32.mrf.mxu0 }
0x1090   :  { %v4925_v58 = vadd.f32 %v6276_v57, %v5443_v56 }
0x1091   :  { %v4919_v59 = vpop.f32.mrf.mxu0 }
0x1092   :  { %v4920_v63 = vadd.f32 %v5443_v56, %v4919_v59  ;;  %v4929_v0 = vadd.f32 %v4925_v58, %v4741_v39 }
0x1094   :  { %v4935_v1 = vsel %vm179_vm2, %v4929_v0, 0.0  ;;  %v4928_v2 = vadd.f32 %v4920_v63, %v4740_v38 }
0x1095   :  { %4936 = vadd.xlane.f32.xlu0 %v4935_v1 }
0x1096   :  { %v4932_v3 = vsel %vm179_vm2, %v4928_v2, 0.0 }
0x1097   :  { %4933 = vadd.xlane.f32.xlu1 %v4932_v3 }
0x111e   :  { %v4937_v4 = vpop.xlane.xlu0 %4936 }
0x111f   :  { %v4939_v5 = vmul.f32 0.03125, %v4937_v4 }
0x1120   :  { %v4934_v6 = vpop.xlane.xlu1 %4933 }
0x1121   :  { %v4941_v7 = vsub.f32 %v4929_v0, %v4939_v5  ;;  %v4938_v8 = vmul.f32 0.03125, %v4934_v6 }
0x1123   :  { %v4940_v9 = vsub.f32 %v4928_v2, %v4938_v8  ;;  %v4943_v10 = vmul.f32 %v4941_v7, %v4941_v7 }
0x1125   :  { %v4947_v11 = vsel %vm179_vm2, %v4943_v10, 0.0  ;;  %v4942_v31 = vmul.f32 %v4940_v9, %v4940_v9 }
0x1126   :  { %4948 = vadd.xlane.f32.xlu0 %v4947_v11 }
0x1127   :  { %v4944_v12 = vsel %vm179_vm2, %v4942_v31, 0.0 }
0x1128   :  { %4945 = vadd.xlane.f32.xlu1 %v4944_v12 }
0x113c   :  { %5048 = vperm.xlu0 %6295, %v5045_v21  }
0x11af   :  { %v4949_v41 = vpop.xlane.xlu0 %4948 }
0x11b0   :  { %v4951_v52 = vmul.f32 0.03125, %v4949_v41 }
0x11b1   :  { %v4946_v14 = vpop.xlane.xlu1 %4945 }
0x11b2   :  { %v4953_v60 = vadd.f32 1e-05, %v4951_v52  ;;  %v4950_v32 = vmul.f32 0.03125, %v4946_v14 }
0x11b4   :  { %6372 = vrsqrt.f32 %v4953_v60  ;;  %v4952_v18 = vadd.f32 1e-05, %v4950_v32 }
0x11b6   :  { %6374 = vrsqrt.f32 %v4952_v18 }
0x11b7   :  { %v5049_v25 = vpop.permute.xlu0 %5048 }
0x11c1   :  { %v6373_v17 = vpop.eup %6372 }
0x11c2   :  { %v4957_v34 = vmul.f32 %v6373_v17, %v4941_v7 }
0x11c3   :  { %v6375_v33 = vpop.eup %6374 }
0x11c4   :  { %v4963_v42 = vmul.f32 %v5446_v15, %v4957_v34  ;;  %v4956_v62 = vmul.f32 %v6375_v33, %v4940_v9 }
0x11c6   :  { %v4969_v16 = vadd.f32 %v5447_v61, %v4963_v42  ;;  %v4962_v19 = vmul.f32 %v5446_v15, %v4956_v62 }
0x11c8   :  { %6278 = vmatpush3.msra.mxu1 %v4969_v16  ;;  %v4968_v20 = vadd.f32 %v5447_v61, %v4962_v19 }
0x11c9   :  { %6279 = vmatprep.subr.mxu1 %v6418_v13 }
0x11ca   :  { %6280 = vmatpush3.msra.mxu1 %v4968_v20 }
0x11cb   :  { %6282 = vmatmul.mubr.msk.f32.vlgmr.msra.gmra.mxu1 %vm1469_vm9, %v4970_v49  ;;  %6284 = vmatprep.subr.mxu1 %v6418_v13 }
0x11cc   :  { %6286 = vmatprep.mubr.msk.f32.mxu1 %vm6419_vm11, %v6418_v13 }
0x128b   :  { %v5040_v22 = vpop.f32.mrf.mxu1 }
0x128c   :  { %6285 = vmatpush3.xpose.msk.msra.mxu1 %vm179_vm2, %v5040_v22 }
0x128d   :  { %v6283_v24 = vpop.f32.mrf.mxu1 }
0x128f   :  { %6287 = vmatmul.mubr.msk.f32.vlgmr.msra.gmra.mxu1 %vm179_vm2, %v5044_v23 }
0x134f   :  { %v5123_v26 = vpop.f32.mrf.mxu1 }
0x1350   :  { %v5124_v27 = vadd.f32 %v5123_v26, %v5049_v25 }
0x1351   :  { %v6288_v28 = vpop.f32.mrf.mxu1 }
0x1352   :  { %v5451_v29 = vmul.f32 -1.442695, %v5124_v27 }
0x1354   :  { %6376 = vpow2.f32 %v5451_v29 }
0x1361   :  { %v6377_v30 = vpop.eup %6376 }
0x1362   :  { %v5130_v35 = vadd.f32 1.0, %v6377_v30 }
0x1364   :  { %6378 = vrcp.f32 %v5130_v35 }
0x1371   :  { %v6379_v36 = vpop.eup %6378 }
0x1372   :  { %5134 = vst.msk [vmem:[#allocation5] sm:$0x1] %vm5133_vm12, %v6379_v36 }
0x1373   :  { %6403 = shalt.err (!%p6400_p9)
}
0x1374   :  { %5144 = dma.vmem_to_hbm [thread:$0]  %s5142_s13, 16, %s7414_s4, [#allocation3]  }
0x1375   :  { %6414 = dma.done.wait [#allocation3], 16  }
0x1376   :  { %6415 = vsyncadd [#allocation3], 4294967280 }
0x1377   :  { %5148 = vsyncpa [#allocation3], 1 }
0x1378   :  { %5149 = vsyncpa [#allocation4], 1 }

</bundles_post_ra>
